<compile_context>
chip_gen: v7x
topology: tpu7x:2x2x1
jax: 0.10.0
libtpu: 0.0.40
codegen_flags: <defaults>
</compile_context>

<pallas_src>
import functools

import jax
import jax.numpy as jnp
from jax.experimental import pallas as pl
from jax.experimental.pallas import tpu as pltpu


def _round_up(n, m):
    return (n + m - 1) // m * m


# -----------------------------------------------------------------------------
# Fused Pallas kernel: encoder conv (single matmul) + pool + both MLP heads
# -----------------------------------------------------------------------------
def _clover_fused_kernel(x_ref, wc_ref, bc_ref,
                         w1_ref, b1_ref, w2_ref, b2_ref,
                         w3_ref, b3_ref, w4_ref, b4_ref,
                         out_ref, *, bt, hw):
    # --- synthetic SelaEncoder: 3x3 conv as ONE lane-dense (128-deep) matmul.
    # x_ref: (bt*hw, 128) bf16 im2col patches; wc_ref: (128, K) bf16.
    conv = jnp.dot(x_ref[...], wc_ref[...],
                   preferred_element_type=jnp.float32)            # (bt*hw, K) f32
    h = jnp.maximum(conv + bc_ref[...], 0.0)                      # bias + ReLU

    # Global average pool over the hw spatial rows of each image.  hw is a
    # multiple of 8, so this reshape only regroups whole (8,128) tiles.
    enc = jnp.sum(h.reshape(bt, hw, h.shape[-1]), axis=1) * (1.0 / hw)  # (bt, K)

    # --- content_head + projection_head: bf16 matmuls, f32 accumulation, M=bt.
    def linear(a, w_ref, b_ref):
        return jnp.dot(a.astype(jnp.bfloat16), w_ref[...],
                       preferred_element_type=jnp.float32) + b_ref[...]

    h1 = jnp.maximum(linear(enc, w1_ref, b1_ref), 0.0)
    h2 = linear(h1, w2_ref, b2_ref)
    g1 = jnp.maximum(linear(h2, w3_ref, b3_ref), 0.0)
    g = linear(g1, w4_ref, b4_ref)                                # (bt, proj_dim)

    # --- F.normalize(dim=1): g / max(||g||, 1e-12) == g * rsqrt(max(ss, 1e-24))
    ss = jnp.sum(g * g, axis=1, keepdims=True)
    out_ref[...] = g * jax.lax.rsqrt(jnp.maximum(ss, 1e-24))


# -----------------------------------------------------------------------------
# JAX wrapper
# -----------------------------------------------------------------------------
def clover_forward(params, x, mask=None, *, block_batch=64):
    """Forward pass equivalent to CLOVER_Net.forward(x, mask, use_head=True)."""
    if mask is not None:
        x = jnp.concatenate([x, mask], axis=1)       # cat along channel dim (dim=1)

    B, C, H, W = x.shape
    hw = H * W
    # TODO(synk): pad/mask the hw rows if H*W is ever not a multiple of 8.
    assert hw % 8 == 0, "H*W must be a multiple of 8 for the fused pool"

    Kc = params["wc"].shape[0]                        # im2col contraction (128)
    K = params["wc"].shape[1]                         # encoder output dim
    CL = params["w1"].shape[1]                        # content_length
    proj = params["w4"].shape[1]                      # projection dim
    assert 9 * C <= Kc

    # --- batch tile.  Default Bt=64 keeps the double-buffered x block
    # (Bt*hw*128*2 B) plus the f32 conv intermediate well under the 32 MiB
    # default scoped VMEM on all generations (incl. v7x's 64 MiB physical).
    bt = min(block_batch, B)
    # v7x has 2 TensorCores: prefer >= 2 grid steps when B is large enough
    # that each step still keeps a healthy M for the head matmuls.
    if pl.cdiv(B, bt) < 2 and B >= 16:
        bt = pl.cdiv(B, 2)
    n_tiles = pl.cdiv(B, bt)
    B_pad = n_tiles * bt

    # --- im2col in bf16: NCHW -> NHWC, zero-pad spatially (pad=1), gather the
    # nine 3x3 taps along the channel axis, pad the contraction dim to 128.
    xh = jnp.transpose(x, (0, 2, 3, 1)).astype(jnp.bfloat16)
    xp = jnp.pad(xh, ((0, 0), (1, 1), (1, 1), (0, 0)))
    taps = [xp[:, dh:dh + H, dw:dw + W, :] for dh in range(3) for dw in range(3)]
    patches = jnp.concatenate(taps, axis=-1).reshape(B, hw, 9 * C)
    patches = jnp.pad(patches,
                      ((0, B_pad - B), (0, 0), (0, Kc - 9 * C)))  # zero batch tail
    x_im2col = patches.reshape(B_pad * hw, Kc)                    # (B_pad*hw, 128) bf16

    def x_map(i): return (i, 0)
    def out_map(i): return (i, 0)
    def const2(i): return (0, 0)

    # Advisory cost model so XLA schedules this small custom call sensibly.
    flops = 2 * B_pad * (hw * Kc * K + K * CL + 2 * CL * CL + CL * proj)
    weight_bytes = 2 * (Kc * K + K * CL + 2 * CL * CL + CL * proj) \
        + 4 * (K + 3 * CL + proj)
    bytes_accessed = B_pad * hw * Kc * 2 + weight_bytes + B_pad * proj * 4
    cost = pl.CostEstimate(flops=flops, transcendentals=B_pad,
                           bytes_accessed=bytes_accessed)

    kernel = functools.partial(_clover_fused_kernel, bt=bt, hw=hw)
    out = pl.pallas_call(
        kernel,
        out_shape=jax.ShapeDtypeStruct((B_pad, proj), jnp.float32),
        grid=(n_tiles,),
        in_specs=[
            pl.BlockSpec((bt * hw, Kc), x_map),                  # im2col patches
            pl.BlockSpec((Kc, K), const2),                       # conv weight (bf16)
            pl.BlockSpec((1, K), const2),                        # conv bias  (f32)
            pl.BlockSpec((K, CL), const2),                       # w1
            pl.BlockSpec((1, CL), const2),                       # b1
            pl.BlockSpec((CL, CL), const2),                      # w2
            pl.BlockSpec((1, CL), const2),                       # b2
            pl.BlockSpec((CL, CL), const2),                      # w3
            pl.BlockSpec((1, CL), const2),                       # b3
            pl.BlockSpec((CL, proj), const2),                    # w4
            pl.BlockSpec((1, proj), const2),                     # b4
        ],
        out_specs=pl.BlockSpec((bt, proj), out_map),
        compiler_params=pltpu.CompilerParams(
            dimension_semantics=("parallel",)),
        cost_estimate=cost,
    )(x_im2col, params["wc"], params["bc"],
      params["w1"], params["b1"], params["w2"], params["b2"],
      params["w3"], params["b3"], params["w4"], params["b4"])
    return out[:B]


# -----------------------------------------------------------------------------
# Pure-JAX reference (mirrors the kernel's bf16-input / f32-accumulation math)
# -----------------------------------------------------------------------------
def clover_forward_ref(params, x, mask=None):
    if mask is not None:
        x = jnp.concatenate([x, mask], axis=1)
    B, C, H, W = x.shape
    xh = jnp.transpose(x, (0, 2, 3, 1)).astype(jnp.bfloat16)
    xp = jnp.pad(xh, ((0, 0), (1, 1), (1, 1), (0, 0)))
    taps = [xp[:, dh:dh + H, dw:dw + W, :] for dh in range(3) for dw in range(3)]
    patches = jnp.concatenate(taps, axis=-1).reshape(B, H * W, 9 * C)

    wc = params["wc"][:9 * C, :]                                  # (9*C, K) bf16
    conv = jnp.einsum("bpc,ck->bpk", patches, wc,
                      preferred_element_type=jnp.float32)
    h = jnp.maximum(conv + params["bc"], 0.0)
    enc = jnp.mean(h, axis=1)                                     # (B, K)

    def linear(a, w, b):
        return jnp.dot(a.astype(jnp.bfloat16), w,
                       preferred_element_type=jnp.float32) + b

    h1 = jnp.maximum(linear(enc, params["w1"], params["b1"]), 0.0)
    h2 = linear(h1, params["w2"], params["b2"])
    g1 = jnp.maximum(linear(h2, params["w3"], params["b3"]), 0.0)
    g = linear(g1, params["w4"], params["b4"])
    n = jnp.maximum(jnp.sqrt(jnp.sum(g * g, axis=1, keepdims=True)), 1e-12)
    return g / n


# -----------------------------------------------------------------------------
# Deterministic parameter init (kaiming_normal_ with relu gain, zero biases)
# Weights are stored persistently as bf16 (MXU inputs); biases stay f32.
# -----------------------------------------------------------------------------
def init_params(key, in_channels, enc_dim, content_len, proj_dim):
    ks = jax.random.split(key, 5)

    def kaiming(k, fan_in, shape):
        std = (2.0 / fan_in) ** 0.5
        return std * jax.random.normal(k, shape, jnp.float32)

    kc = _round_up(9 * in_channels, 128)              # 128-deep im2col contraction
    wc = jnp.zeros((kc, enc_dim), jnp.float32)
    wc = wc.at[:9 * in_channels, :].set(
        kaiming(ks[0], in_channels * 9, (9 * in_channels, enc_dim)))
    return {
        # synthetic SelaEncoder conv weight in im2col layout: (9*C padded->128, K)
        "wc": wc.astype(jnp.bfloat16),
        "bc": jnp.zeros((1, enc_dim), jnp.float32),
        # content_head: Linear(enc_dim, content_len) -> ReLU -> Linear(content_len, content_len)
        "w1": kaiming(ks[1], enc_dim, (enc_dim, content_len)).astype(jnp.bfloat16),
        "b1": jnp.zeros((1, content_len), jnp.float32),
        "w2": kaiming(ks[2], content_len, (content_len, content_len)).astype(jnp.bfloat16),
        "b2": jnp.zeros((1, content_len), jnp.float32),
        # projection_head: Linear(content_len, content_len) -> ReLU -> Linear(content_len, proj_dim)
        "w3": kaiming(ks[3], content_len, (content_len, content_len)).astype(jnp.bfloat16),
        "b3": jnp.zeros((1, content_len), jnp.float32),
        "w4": kaiming(ks[4], content_len, (content_len, proj_dim)).astype(jnp.bfloat16),
        "b4": jnp.zeros((1, proj_dim), jnp.float32),
    }


if __name__ == "__main__":
    B, C, H, W = 2, 4, 16, 16
    # Lane-dense head dims: enc_dim=128 (synthetic encoder), content_length=384
    # and projection dim 128 are the module defaults.
    ENC_DIM, CONTENT_LEN, PROJ_DIM = 128, 384, 128

    key = jax.random.PRNGKey(0)
    k_x, k_p = jax.random.split(key)
    x = jax.random.normal(k_x, (B, C, H, W), jnp.float32)
    params = init_params(k_p, C, ENC_DIM, CONTENT_LEN, PROJ_DIM)

    out = jax.jit(clover_forward)(params, x)
    out = jax.block_until_ready(out)

    ref = clover_forward_ref(params, x)
    assert out.shape == (B, PROJ_DIM)
    assert bool(jnp.allclose(out, ref, atol=5e-3, rtol=5e-3)), "mismatch vs reference"

    print("KERNEL_OK")
</pallas_src>

<mosaic_0001>
module attributes {stable_mosaic.version = 11 : i64} {
  func.func @_clover_fused_kernel(%arg0: i32, %arg1: memref<512x128xbf16, #tpu.memory_space<vmem>>, %arg2: memref<128x128xbf16, #tpu.memory_space<vmem>>, %arg3: memref<1x128xf32, #tpu.memory_space<vmem>>, %arg4: memref<128x384xbf16, #tpu.memory_space<vmem>>, %arg5: memref<1x384xf32, #tpu.memory_space<vmem>>, %arg6: memref<384x384xbf16, #tpu.memory_space<vmem>>, %arg7: memref<1x384xf32, #tpu.memory_space<vmem>>, %arg8: memref<384x384xbf16, #tpu.memory_space<vmem>>, %arg9: memref<1x384xf32, #tpu.memory_space<vmem>>, %arg10: memref<384x128xbf16, #tpu.memory_space<vmem>>, %arg11: memref<1x128xf32, #tpu.memory_space<vmem>>, %arg12: memref<2x128xf32, #tpu.memory_space<vmem>>) attributes {dimension_semantics = [#tpu.dimension_semantics<parallel>], iteration_bounds = array<i64: 1>, scalar_prefetch = 0 : i64, scratch_operands = 0 : i64, tpu.core_type = #tpu.core_type<tc>, window_params = [{transform_indices = @transform_0, window_bounds = array<i64: 512, 128>}, {pipeline_mode = #tpu.pipeline_mode<synchronous>, transform_indices = @transform_1, window_bounds = array<i64: 128, 128>}, {pipeline_mode = #tpu.pipeline_mode<synchronous>, transform_indices = @transform_2, window_bounds = array<i64: 1, 128>}, {pipeline_mode = #tpu.pipeline_mode<synchronous>, transform_indices = @transform_3, window_bounds = array<i64: 128, 384>}, {pipeline_mode = #tpu.pipeline_mode<synchronous>, transform_indices = @transform_4, window_bounds = array<i64: 1, 384>}, {pipeline_mode = #tpu.pipeline_mode<synchronous>, transform_indices = @transform_5, window_bounds = array<i64: 384, 384>}, {pipeline_mode = #tpu.pipeline_mode<synchronous>, transform_indices = @transform_6, window_bounds = array<i64: 1, 384>}, {pipeline_mode = #tpu.pipeline_mode<synchronous>, transform_indices = @transform_7, window_bounds = array<i64: 384, 384>}, {pipeline_mode = #tpu.pipeline_mode<synchronous>, transform_indices = @transform_8, window_bounds = array<i64: 1, 384>}, {pipeline_mode = #tpu.pipeline_mode<synchronous>, transform_indices = @transform_9, window_bounds = array<i64: 384, 128>}, {pipeline_mode = #tpu.pipeline_mode<synchronous>, transform_indices = @transform_10, window_bounds = array<i64: 1, 128>}, {transform_indices = @transform_11, window_bounds = array<i64: 2, 128>}]} {
    %c0 = arith.constant 0 : index
    %c0_0 = arith.constant 0 : index
    %0 = vector.load %arg1[%c0, %c0_0] : memref<512x128xbf16, #tpu.memory_space<vmem>>, vector<512x128xbf16>
    %c0_1 = arith.constant 0 : index
    %c0_2 = arith.constant 0 : index
    %1 = vector.load %arg2[%c0_1, %c0_2] : memref<128x128xbf16, #tpu.memory_space<vmem>>, vector<128x128xbf16>
    %cst = arith.constant dense<0.000000e+00> : vector<512x128xf32>
    %2 = tpu.matmul %0, %1, %cst {dimension_numbers = #tpu.dot_dimension_numbers<[1], [0], [0], [1], [0, 0, 1, 1], [], []>} : vector<512x128xbf16>, vector<128x128xbf16>, vector<512x128xf32> -> vector<512x128xf32>
    %c0_3 = arith.constant 0 : index
    %c0_4 = arith.constant 0 : index
    %3 = vector.load %arg3[%c0_3, %c0_4] : memref<1x128xf32, #tpu.memory_space<vmem>>, vector<1x128xf32>
    %4 = vector.broadcast %3 : vector<1x128xf32> to vector<512x128xf32>
    %5 = arith.addf %2, %4 : vector<512x128xf32>
    %cst_5 = arith.constant 0.000000e+00 : f32
    %6 = vector.broadcast %cst_5 : f32 to vector<512x128xf32>
    %7 = arith.maximumf %5, %6 : vector<512x128xf32>
    %8 = vector.shape_cast %7 : vector<512x128xf32> to vector<2x256x128xf32>
    %cst_6 = arith.constant dense<0.000000e+00> : vector<2x128xf32>
    %9 = vector.multi_reduction <add>, %8, %cst_6 [1] : vector<2x256x128xf32> to vector<2x128xf32>
    %cst_7 = arith.constant 3.906250e-03 : f32
    %10 = vector.broadcast %cst_7 : f32 to vector<2x128xf32>
    %11 = arith.mulf %9, %10 : vector<2x128xf32>
    %12 = arith.truncf %11 : vector<2x128xf32> to vector<2x128xbf16>
    %c0_8 = arith.constant 0 : index
    %c0_9 = arith.constant 0 : index
    %13 = vector.load %arg4[%c0_8, %c0_9] : memref<128x384xbf16, #tpu.memory_space<vmem>>, vector<128x384xbf16>
    %cst_10 = arith.constant dense<0.000000e+00> : vector<2x384xf32>
    %14 = tpu.matmul %12, %13, %cst_10 {dimension_numbers = #tpu.dot_dimension_numbers<[1], [0], [0], [1], [0, 0, 1, 1], [], []>} : vector<2x128xbf16>, vector<128x384xbf16>, vector<2x384xf32> -> vector<2x384xf32>
    %c0_11 = arith.constant 0 : index
    %c0_12 = arith.constant 0 : index
    %15 = vector.load %arg5[%c0_11, %c0_12] : memref<1x384xf32, #tpu.memory_space<vmem>>, vector<1x384xf32>
    %16 = vector.broadcast %15 : vector<1x384xf32> to vector<2x384xf32>
    %17 = arith.addf %14, %16 : vector<2x384xf32>
    %cst_13 = arith.constant 0.000000e+00 : f32
    %18 = vector.broadcast %cst_13 : f32 to vector<2x384xf32>
    %19 = arith.maximumf %17, %18 : vector<2x384xf32>
    %20 = arith.truncf %19 : vector<2x384xf32> to vector<2x384xbf16>
    %c0_14 = arith.constant 0 : index
    %c0_15 = arith.constant 0 : index
    %21 = vector.load %arg6[%c0_14, %c0_15] : memref<384x384xbf16, #tpu.memory_space<vmem>>, vector<384x384xbf16>
    %cst_16 = arith.constant dense<0.000000e+00> : vector<2x384xf32>
    %22 = tpu.matmul %20, %21, %cst_16 {dimension_numbers = #tpu.dot_dimension_numbers<[1], [0], [0], [1], [0, 0, 1, 1], [], []>} : vector<2x384xbf16>, vector<384x384xbf16>, vector<2x384xf32> -> vector<2x384xf32>
    %c0_17 = arith.constant 0 : index
    %c0_18 = arith.constant 0 : index
    %23 = vector.load %arg7[%c0_17, %c0_18] : memref<1x384xf32, #tpu.memory_space<vmem>>, vector<1x384xf32>
    %24 = vector.broadcast %23 : vector<1x384xf32> to vector<2x384xf32>
    %25 = arith.addf %22, %24 : vector<2x384xf32>
    %26 = arith.truncf %25 : vector<2x384xf32> to vector<2x384xbf16>
    %c0_19 = arith.constant 0 : index
    %c0_20 = arith.constant 0 : index
    %27 = vector.load %arg8[%c0_19, %c0_20] : memref<384x384xbf16, #tpu.memory_space<vmem>>, vector<384x384xbf16>
    %cst_21 = arith.constant dense<0.000000e+00> : vector<2x384xf32>
    %28 = tpu.matmul %26, %27, %cst_21 {dimension_numbers = #tpu.dot_dimension_numbers<[1], [0], [0], [1], [0, 0, 1, 1], [], []>} : vector<2x384xbf16>, vector<384x384xbf16>, vector<2x384xf32> -> vector<2x384xf32>
    %c0_22 = arith.constant 0 : index
    %c0_23 = arith.constant 0 : index
    %29 = vector.load %arg9[%c0_22, %c0_23] : memref<1x384xf32, #tpu.memory_space<vmem>>, vector<1x384xf32>
    %30 = vector.broadcast %29 : vector<1x384xf32> to vector<2x384xf32>
    %31 = arith.addf %28, %30 : vector<2x384xf32>
    %cst_24 = arith.constant 0.000000e+00 : f32
    %32 = vector.broadcast %cst_24 : f32 to vector<2x384xf32>
    %33 = arith.maximumf %31, %32 : vector<2x384xf32>
    %34 = arith.truncf %33 : vector<2x384xf32> to vector<2x384xbf16>
    %c0_25 = arith.constant 0 : index
    %c0_26 = arith.constant 0 : index
    %35 = vector.load %arg10[%c0_25, %c0_26] : memref<384x128xbf16, #tpu.memory_space<vmem>>, vector<384x128xbf16>
    %cst_27 = arith.constant dense<0.000000e+00> : vector<2x128xf32>
    %36 = tpu.matmul %34, %35, %cst_27 {dimension_numbers = #tpu.dot_dimension_numbers<[1], [0], [0], [1], [0, 0, 1, 1], [], []>} : vector<2x384xbf16>, vector<384x128xbf16>, vector<2x128xf32> -> vector<2x128xf32>
    %c0_28 = arith.constant 0 : index
    %c0_29 = arith.constant 0 : index
    %37 = vector.load %arg11[%c0_28, %c0_29] : memref<1x128xf32, #tpu.memory_space<vmem>>, vector<1x128xf32>
    %38 = vector.broadcast %37 : vector<1x128xf32> to vector<2x128xf32>
    %39 = arith.addf %36, %38 : vector<2x128xf32>
    %40 = arith.mulf %39, %39 : vector<2x128xf32>
    %cst_30 = arith.constant dense<0.000000e+00> : vector<2xf32>
    %41 = vector.multi_reduction <add>, %40, %cst_30 [1] : vector<2x128xf32> to vector<2xf32>
    %42 = vector.shape_cast %41 : vector<2xf32> to vector<2x1xf32>
    %cst_31 = arith.constant 1.000000e-24 : f32
    %43 = vector.broadcast %cst_31 : f32 to vector<2x1xf32>
    %44 = arith.maximumf %42, %43 : vector<2x1xf32>
    %45 = math.rsqrt %44 : vector<2x1xf32>
    %46 = vector.broadcast %45 : vector<2x1xf32> to vector<2x128xf32>
    %47 = arith.mulf %39, %46 : vector<2x128xf32>
    %c0_32 = arith.constant 0 : index
    %c0_33 = arith.constant 0 : index
    %48 = vector.load %arg12[%c0_32, %c0_33] : memref<2x128xf32, #tpu.memory_space<vmem>>, vector<2x128xf32>
    tpu.vector_store %arg12[%c0_32, %c0_33], %47 {strides = array<i32>} : memref<2x128xf32, #tpu.memory_space<vmem>>, vector<2x128xf32>,
    return
  }
  func.func @transform_0(%arg0: i32) -> (i32, i32) {
    %c0_i32 = arith.constant 0 : i32
    %c0_i32_0 = arith.constant 0 : i32
    return %arg0, %c0_i32 : i32, i32
  }
  func.func @transform_1(%arg0: i32) -> (i32, i32) {
    %c0_i32 = arith.constant 0 : i32
    %c0_i32_0 = arith.constant 0 : i32
    %c0_i32_1 = arith.constant 0 : i32
    return %c0_i32, %c0_i32_0 : i32, i32
  }
  func.func @transform_2(%arg0: i32) -> (i32, i32) {
    %c0_i32 = arith.constant 0 : i32
    %c0_i32_0 = arith.constant 0 : i32
    %c0_i32_1 = arith.constant 0 : i32
    return %c0_i32, %c0_i32_0 : i32, i32
  }
  func.func @transform_3(%arg0: i32) -> (i32, i32) {
    %c0_i32 = arith.constant 0 : i32
    %c0_i32_0 = arith.constant 0 : i32
    %c0_i32_1 = arith.constant 0 : i32
    return %c0_i32, %c0_i32_0 : i32, i32
  }
  func.func @transform_4(%arg0: i32) -> (i32, i32) {
    %c0_i32 = arith.constant 0 : i32
    %c0_i32_0 = arith.constant 0 : i32
    %c0_i32_1 = arith.constant 0 : i32
    return %c0_i32, %c0_i32_0 : i32, i32
  }
  func.func @transform_5(%arg0: i32) -> (i32, i32) {
    %c0_i32 = arith.constant 0 : i32
    %c0_i32_0 = arith.constant 0 : i32
    %c0_i32_1 = arith.constant 0 : i32
    return %c0_i32, %c0_i32_0 : i32, i32
  }
  func.func @transform_6(%arg0: i32) -> (i32, i32) {
    %c0_i32 = arith.constant 0 : i32
    %c0_i32_0 = arith.constant 0 : i32
    %c0_i32_1 = arith.constant 0 : i32
    return %c0_i32, %c0_i32_0 : i32, i32
  }
  func.func @transform_7(%arg0: i32) -> (i32, i32) {
    %c0_i32 = arith.constant 0 : i32
    %c0_i32_0 = arith.constant 0 : i32
    %c0_i32_1 = arith.constant 0 : i32
    return %c0_i32, %c0_i32_0 : i32, i32
  }
  func.func @transform_8(%arg0: i32) -> (i32, i32) {
    %c0_i32 = arith.constant 0 : i32
    %c0_i32_0 = arith.constant 0 : i32
    %c0_i32_1 = arith.constant 0 : i32
    return %c0_i32, %c0_i32_0 : i32, i32
  }
  func.func @transform_9(%arg0: i32) -> (i32, i32) {
    %c0_i32 = arith.constant 0 : i32
    %c0_i32_0 = arith.constant 0 : i32
    %c0_i32_1 = arith.constant 0 : i32
    return %c0_i32, %c0_i32_0 : i32, i32
  }
  func.func @transform_10(%arg0: i32) -> (i32, i32) {
    %c0_i32 = arith.constant 0 : i32
    %c0_i32_0 = arith.constant 0 : i32
    %c0_i32_1 = arith.constant 0 : i32
    return %c0_i32, %c0_i32_0 : i32, i32
  }
  func.func @transform_11(%arg0: i32) -> (i32, i32) {
    %c0_i32 = arith.constant 0 : i32
    %c0_i32_0 = arith.constant 0 : i32
    return %arg0, %c0_i32 : i32, i32
  }
}

</mosaic_0001>

<bundles_post_ra>
// kernel: clover_forward.1
= control target key start
LH: loop header
LB: loop body
LE: loop exit
PB: predicated region body
PF: predicated region fallthrough
CT: control target
= control target key end

     0   :  { %s4489_s0 = inlined_call_operand.vmem [shape: bf16[512,128], index: 0, kind: input, shape index: {}]   ;;  %s4490_s1 = inlined_call_operand.vmem [shape: bf16[128,128], index: 1, kind: input, shape index: {}]   ;;  %s4491_s2 = inlined_call_operand.vmem [shape: f32[1,128], index: 2, kind: input, shape index: {}]   ;;  %s4492_s3 = inlined_call_operand.vmem [shape: bf16[128,384], index: 3, kind: input, shape index: {}]   ;;  %s4493_s4 = inlined_call_operand.vmem [shape: f32[1,384], index: 4, kind: input, shape index: {}]   ;;  %s4494_s5 = inlined_call_operand.vmem [shape: bf16[384,384], index: 5, kind: input, shape index: {}]   ;;  %s4495_s6 = inlined_call_operand.vmem [shape: f32[1,384], index: 6, kind: input, shape index: {}]   ;;  %s4496_s7 = inlined_call_operand.vmem [shape: bf16[384,384], index: 7, kind: input, shape index: {}]   ;;  %s4497_s8 = inlined_call_operand.vmem [shape: f32[1,384], index: 8, kind: input, shape index: {}]   ;;  %s4498_s9 = inlined_call_operand.vmem [shape: bf16[384,128], index: 9, kind: input, shape index: {}]   ;;  %s4499_s10 = inlined_call_operand.vmem [shape: f32[1,128], index: 10, kind: input, shape index: {}]   ;;  %s4500_s11 = inlined_call_operand.hbm [shape: f32[2,128], index: 11, kind: output, shape index: {}]  }
   0x1   :  { %v3251_v0 = vld [vmem:[%s4490_s1] sm:$0xff]   ;;  %v3252_v1 = vld [vmem:[%s4490_s1 + $0x8] sm:$0xff]   ;;  %v3253_v2 = vld [vmem:[%s4490_s1 + $0x10] sm:$0xff]  }
   0x2   :  { %3075 = vmatprep.subr.bf16.mxu0 %v3251_v0  ;;  %v3254_v3 = vld [vmem:[%s4490_s1 + $0x18] sm:$0xff]   ;;  %v3259_v4 = vld [vmem:[%s4489_s0] sm:$0xff]   ;;  %v3256_v6 = vld [vmem:[%s4490_s1 + $0x28] sm:$0xff]  }
   0x3   :  { %3076 = vmatpush3.bf16.msra.mxu0 %v3251_v0  ;;  %3091 = vmatprep.mubr.bf16.mxu0 %v3259_v4  ;;  %v3255_v5 = vld [vmem:[%s4490_s1 + $0x20] sm:$0xff]   ;;  %v3257_v7 = vld [vmem:[%s4490_s1 + $0x30] sm:$0xff]   ;;  %v3258_v8 = vld [vmem:[%s4490_s1 + $0x38] sm:$0xff]  }
   0x4   :  { %3077 = vmatprep.subr.bf16.mxu0 %v3252_v1  ;;  %v3260_v9 = vld [vmem:[%s4489_s0 + $0x8] sm:$0xff]   ;;  %v3261_v10 = vld [vmem:[%s4489_s0 + $0x10] sm:$0xff]   ;;  %v3262_v11 = vld [vmem:[%s4489_s0 + $0x18] sm:$0xff]  }
   0x5   :  { %v3263_v12 = vld [vmem:[%s4489_s0 + $0x20] sm:$0xff]   ;;  %v3264_v13 = vld [vmem:[%s4489_s0 + $0x28] sm:$0xff]   ;;  %v3265_v14 = vld [vmem:[%s4489_s0 + $0x30] sm:$0xff]  }
   0x6   :  { %v3266_v15 = vld [vmem:[%s4489_s0 + $0x38] sm:$0xff]   ;;  %v3267_v16 = vld [vmem:[%s4489_s0 + $0x40] sm:$0xff]   ;;  %v3268_v17 = vld [vmem:[%s4489_s0 + $0x48] sm:$0xff]  }
   0x7   :  { %3078 = vmatpush3.bf16.msra.mxu0 %v3252_v1  ;;  %v3269_v18 = vld [vmem:[%s4489_s0 + $0x50] sm:$0xff]   ;;  %v3270_v19 = vld [vmem:[%s4489_s0 + $0x58] sm:$0xff]   ;;  %v3271_v20 = vld [vmem:[%s4489_s0 + $0x60] sm:$0xff]  }
   0x8   :  { %3079 = vmatprep.subr.bf16.mxu0 %v3253_v2  ;;  %v3272_v21 = vld [vmem:[%s4489_s0 + $0x68] sm:$0xff]   ;;  %v3273_v22 = vld [vmem:[%s4489_s0 + $0x70] sm:$0xff]   ;;  %v3274_v23 = vld [vmem:[%s4489_s0 + $0x78] sm:$0xff]  }
   0x9   :  { %v3275_v24 = vld [vmem:[%s4489_s0 + $0x80] sm:$0xff]   ;;  %v3276_v25 = vld [vmem:[%s4489_s0 + $0x88] sm:$0xff]   ;;  %v3277_v26 = vld [vmem:[%s4489_s0 + $0x90] sm:$0xff]  }
   0xa   :  { %v3278_v27 = vld [vmem:[%s4489_s0 + $0x98] sm:$0xff]   ;;  %v3279_v28 = vld [vmem:[%s4489_s0 + $0xa0] sm:$0xff]   ;;  %v3280_v29 = vld [vmem:[%s4489_s0 + $0xa8] sm:$0xff]  }
   0xb   :  { %3080 = vmatpush3.bf16.msra.mxu0 %v3253_v2  ;;  %v3281_v30 = vld [vmem:[%s4489_s0 + $0xb0] sm:$0xff]   ;;  %v3282_v31 = vld [vmem:[%s4489_s0 + $0xb8] sm:$0xff]   ;;  %v3283_v32 = vld [vmem:[%s4489_s0 + $0xc0] sm:$0xff]  }
   0xc   :  { %3081 = vmatprep.subr.bf16.mxu0 %v3254_v3  ;;  %v3284_v33 = vld [vmem:[%s4489_s0 + $0xc8] sm:$0xff]   ;;  %v3285_v34 = vld [vmem:[%s4489_s0 + $0xd0] sm:$0xff]  }
   0xf   :  { %3082 = vmatpush3.bf16.msra.mxu0 %v3254_v3 }
  0x10   :  { %3083 = vmatprep.subr.bf16.mxu0 %v3255_v5 }
  0x13   :  { %3084 = vmatpush3.bf16.msra.mxu0 %v3255_v5 }
  0x14   :  { %3085 = vmatprep.subr.bf16.mxu0 %v3256_v6 }
  0x17   :  { %3086 = vmatpush3.bf16.msra.mxu0 %v3256_v6 }
  0x18   :  { %3087 = vmatprep.subr.bf16.mxu0 %v3257_v7 }
  0x1b   :  { %3088 = vmatpush3.bf16.msra.mxu0 %v3257_v7 }
  0x1c   :  { %3089 = vmatprep.subr.bf16.mxu0 %v3258_v8 }
  0x1f   :  { %3090 = vmatpush3.bf16.msra.mxu0 %v3258_v8 }
  0x22   :  { %3092 = vmatmul.mubr.bf16.vlgmr.msra.gmra.mrb[0].mxu0 %v3260_v9 }
  0x23   :  { %3095 = vmatprep.mubr.bf16.mxu0 %v3261_v10 }
  0x2a   :  { %3096 = vmatmul.mubr.bf16.gmra.mrb[4].mxu0 %v3262_v11 }
  0x2b   :  { %3099 = vmatprep.mubr.bf16.mxu0 %v3263_v12 }
  0x32   :  { %3100 = vmatmul.mubr.bf16.gmra.mrb[8].mxu0 %v3264_v13 }
  0x33   :  { %3103 = vmatprep.mubr.bf16.mxu0 %v3265_v14 }
  0x3a   :  { %3104 = vmatmul.mubr.bf16.gmra.mrb[12].mxu0 %v3266_v15 }
  0x3b   :  { %3107 = vmatprep.mubr.bf16.mxu0 %v3267_v16 }
  0x42   :  { %3108 = vmatmul.mubr.bf16.gmra.mrb[16].mxu0 %v3268_v17 }
  0x43   :  { %3111 = vmatprep.mubr.bf16.mxu0 %v3269_v18 }
  0x4a   :  { %3112 = vmatmul.mubr.bf16.gmra.mrb[20].mxu0 %v3270_v19 }
  0x4b   :  { %3115 = vmatprep.mubr.bf16.mxu0 %v3271_v20 }
  0x52   :  { %3116 = vmatmul.mubr.bf16.gmra.mrb[24].mxu0 %v3272_v21 }
  0x53   :  { %3119 = vmatprep.mubr.bf16.mxu0 %v3273_v22 }
  0x5a   :  { %3120 = vmatmul.mubr.bf16.gmra.mrb[28].mxu0 %v3274_v23 }
  0x5b   :  { %3123 = vmatprep.mubr.bf16.mxu0 %v3275_v24 }
  0x62   :  { %3124 = vmatmul.mubr.bf16.gmra.mrb[32].mxu0 %v3276_v25 }
  0x63   :  { %3127 = vmatprep.mubr.bf16.mxu0 %v3277_v26 }
  0x6a   :  { %3128 = vmatmul.mubr.bf16.gmra.mrb[36].mxu0 %v3278_v27 }
  0x6b   :  { %3131 = vmatprep.mubr.bf16.mxu0 %v3279_v28 }
  0x72   :  { %3132 = vmatmul.mubr.bf16.gmra.mrb[40].mxu0 %v3280_v29 }
  0x73   :  { %3135 = vmatprep.mubr.bf16.mxu0 %v3281_v30 }
  0x7a   :  { %3136 = vmatmul.mubr.bf16.gmra.mrb[44].mxu0 %v3282_v31 }
  0x7b   :  { %3139 = vmatprep.mubr.bf16.mxu0 %v3283_v32 }
  0x82   :  { %3140 = vmatmul.mubr.bf16.gmra.mrb[48].mxu0 %v3284_v33 }
  0x83   :  { %3143 = vmatprep.mubr.bf16.mxu0 %v3285_v34 }
  0x84   :  { %16 = vsyncpa [#allocation3], 0  ;;  %v3286_v35 = vld [vmem:[%s4489_s0 + $0xd8] sm:$0xff]   ;;  %v3287_v36 = vld [vmem:[%s4489_s0 + $0xe0] sm:$0xff]   ;;  %v3565_v13 = vmov 0   ;;  %vm851_vm0 = vcmask 1041409  }
  0x85   :  { %v3288_v37 = vld [vmem:[%s4489_s0 + $0xe8] sm:$0xff]   ;;  %v3289_v38 = vld [vmem:[%s4489_s0 + $0xf0] sm:$0xff]   ;;  %v3290_v39 = vld [vmem:[%s4489_s0 + $0xf8] sm:$0xff]   ;;  %1015 = vmatprep.mubr.bf16.mxu1 %v3565_v13  ;;  %vm3567_vm1 = vmmov 0   ;;  %vm2677_vm2 = vcmask 1041408   ;;  %s3568_s21 = smov [#allocation2]  }
  0x86   :  { %v3291_v40 = vld [vmem:[%s4492_s3 + $0x4] ss:$12 sps:$4 sm:$0xff]   ;;  %v3293_v41 = vld [vmem:[%s4492_s3] ss:$12 sps:$4 sm:$0xff]   ;;  %v3294_v42 = vld [vmem:[%s4492_s3 + $0x1c] ss:$12 sps:$4 sm:$0xff]  }
  0x87   :  { %983 = vmatprep.subr.bf16.mxu1 %v3291_v40  ;;  %v3296_v43 = vld [vmem:[%s4492_s3 + $0x18] ss:$12 sps:$4 sm:$0xff]   ;;  %v3764_v44 = vld [vmem:[%s4491_s2] ss:$0 sm:$0xff]  ;;  %v3299_v48 = vld [vmem:[%s4492_s3 + $0x30] ss:$12 sps:$4 sm:$0xff]  }
  0x88   :  { %984 = vmatpush1.bf16.msra.mxu1 %v3293_v41  ;;  %v3297_v46 = vld [vmem:[%s4492_s3 + $0x34] ss:$12 sps:$4 sm:$0xff]   ;;  %v3300_v54 = vld [vmem:[%s4492_s3 + $0x4c] ss:$12 sps:$4 sm:$0xff]   ;;  %v3303_v62 = vld [vmem:[%s4492_s3 + $0x64] ss:$12 sps:$4 sm:$0xff]  }
  0x89   :  { %985 = vmatprep.subr.bf16.mxu1 %v3294_v42  ;;  %v3302_v55 = vld [vmem:[%s4492_s3 + $0x48] ss:$12 sps:$4 sm:$0xff]   ;;  %v3305_v0 = vld [vmem:[%s4492_s3 + $0x60] ss:$12 sps:$4 sm:$0xff]   ;;  %v3308_v11 = vld [vmem:[%s4492_s3 + $0x78] ss:$12 sps:$4 sm:$0xff]  }
  0x8a   :  { %3144 = vmatmul.mubr.bf16.gmra.mrb[52].mxu0 %v3286_v35  ;;  %v3306_v10 = vld [vmem:[%s4492_s3 + $0x7c] ss:$12 sps:$4 sm:$0xff]   ;;  %v3309_v12 = vld [vmem:[%s4492_s3 + $0x94] ss:$12 sps:$4 sm:$0xff]   ;;  %v3312_v21 = vld [vmem:[%s4492_s3 + $0xac] ss:$12 sps:$4 sm:$0xff]  }
  0x8b   :  { %3147 = vmatprep.mubr.bf16.mxu0 %v3287_v36  ;;  %v3311_v17 = vld [vmem:[%s4492_s3 + $0x90] ss:$12 sps:$4 sm:$0xff]   ;;  %v3314_v28 = vld [vmem:[%s4492_s3 + $0xa8] ss:$12 sps:$4 sm:$0xff]   ;;  %s2691_s22 = sshll.u32 %s3568_s21, 4  ;;  %s2692_s22 = int_to_ptr.vmem [resolvable:$true] %s2691_s22 }
  0x8c   :  { %986 = vmatpush1.bf16.msra.mxu1 %v3296_v43  ;;  %p3546_p1 = scmp.lt.s32.totalorder %s2692_s22, %s2692_s22 }
  0x8d   :  { %987 = vmatprep.subr.bf16.mxu1 %v3297_v46 }
  0x90   :  { %988 = vmatpush1.bf16.msra.mxu1 %v3299_v48 }
  0x91   :  { %989 = vmatprep.subr.bf16.mxu1 %v3300_v54 }
  0x92   :  { %3148 = vmatmul.mubr.bf16.gmra.mrb[56].mxu0 %v3288_v37 }
  0x93   :  { %3151 = vmatprep.mubr.bf16.mxu0 %v3289_v38 }
  0x94   :  { %990 = vmatpush1.bf16.msra.mxu1 %v3302_v55 }
  0x95   :  { %991 = vmatprep.subr.bf16.mxu1 %v3303_v62 }
  0x98   :  { %992 = vmatpush1.bf16.msra.mxu1 %v3305_v0 }
  0x99   :  { %993 = vmatprep.subr.bf16.mxu1 %v3306_v10 }
  0x9a   :  { %3152 = vmatmul.mubr.bf16.gmra.mrb[60].mxu0 %v3290_v39  ;;  %v3566_v39 = vmov 0.0  }
  0x9c   :  { %994 = vmatpush1.bf16.msra.mxu1 %v3308_v11 }
  0x9d   :  { %995 = vmatprep.subr.bf16.mxu1 %v3309_v12 }
  0xa0   :  { %996 = vmatpush1.bf16.msra.mxu1 %v3311_v17 }
  0xa1   :  { %997 = vmatprep.subr.bf16.mxu1 %v3312_v21 }
  0xa4   :  { %998 = vmatpush1.bf16.msra.mxu1 %v3314_v28 }
  0xa5   :  { %3155 = vmatprep.subr.bf16.mxu1 %v3566_v39 }
  0xf5   :  { %v3093_v45 = vpop.f32.mrb[0].mxu0 }
  0xf6   :  { %v401_v47 = vpop.f32.mrb[1].mxu0  ;;  %v410_v52 = vadd.f32 %v3093_v45, %v3764_v44 }
  0xf7   :  { %v402_v49 = vadd.f32 %v3764_v44, %v401_v47  ;;  %v3094_v50 = vpop.f32.mrb[2].mxu0 }
  0xf8   :  { %v404_v51 = vpop.f32.mrb[3].mxu0  ;;  %v413_v57 = vadd.f32 %v3094_v50, %v3764_v44  ;;  %v658_v59 = vmax.f32 %v410_v52, 0.0 }
  0xf9   :  { %v405_v53 = vadd.f32 %v3764_v44, %v404_v51  ;;  %v656_v56 = vmax.f32 %v402_v49, 0.0 }
  0xfa   :  { %v659_v1 = vmax.f32 %v413_v57, 0.0 }
  0xfb   :  { %v657_v58 = vmax.f32 %v405_v53, 0.0 }
  0xfd   :  { %v720_v60 = vadd.f32 %v657_v58, %v656_v56  ;;  %v3097_v61 = vpop.f32.mrb[4].mxu0 }
  0xfe   :  { %v417_v63 = vpop.f32.mrb[5].mxu0  ;;  %v426_v5 = vadd.f32 %v3097_v61, %v3764_v44 }
  0xff   :  { %v721_v2 = vadd.f32 %v720_v60, %v658_v59  ;;  %v418_v3 = vadd.f32 %v3764_v44, %v417_v63  ;;  %v3098_v4 = vpop.f32.mrb[6].mxu0 }
 0x100   :  { %v420_v6 = vpop.f32.mrb[7].mxu0  ;;  %v429_v15 = vadd.f32 %v3098_v4, %v3764_v44  ;;  %v662_v18 = vmax.f32 %v426_v5, 0.0 }
 0x101   :  { %v660_v7 = vmax.f32 %v418_v3, 0.0  ;;  %v722_v8 = vadd.f32 %v721_v2, %v659_v1  ;;  %v421_v9 = vadd.f32 %v3764_v44, %v420_v6 }
 0x102   :  { %v663_v23 = vmax.f32 %v429_v15, 0.0 }
 0x103   :  { %v723_v14 = vadd.f32 %v722_v8, %v660_v7  ;;  %v661_v16 = vmax.f32 %v421_v9, 0.0 }
 0x105   :  { %v724_v19 = vadd.f32 %v723_v14, %v661_v16  ;;  %v3101_v20 = vpop.f32.mrb[8].mxu0 }
 0x106   :  { %v433_v22 = vpop.f32.mrb[9].mxu0  ;;  %v442_v29 = vadd.f32 %v3101_v20, %v3764_v44 }
 0x107   :  { %v725_v24 = vadd.f32 %v724_v19, %v662_v18  ;;  %v434_v25 = vadd.f32 %v3764_v44, %v433_v22  ;;  %v3102_v26 = vpop.f32.mrb[10].mxu0 }
 0x108   :  { %v436_v27 = vpop.f32.mrb[11].mxu0  ;;  %v445_v34 = vadd.f32 %v3102_v26, %v3764_v44  ;;  %v666_v36 = vmax.f32 %v442_v29, 0.0 }
 0x109   :  { %v664_v30 = vmax.f32 %v434_v25, 0.0  ;;  %v726_v31 = vadd.f32 %v725_v24, %v663_v23  ;;  %v437_v32 = vadd.f32 %v3764_v44, %v436_v27 }
 0x10a   :  { %v667_v41 = vmax.f32 %v445_v34, 0.0 }
 0x10b   :  { %v727_v33 = vadd.f32 %v726_v31, %v664_v30  ;;  %v665_v35 = vmax.f32 %v437_v32, 0.0 }
 0x10d   :  { %v728_v37 = vadd.f32 %v727_v33, %v665_v35  ;;  %v3105_v38 = vpop.f32.mrb[12].mxu0 }
 0x10e   :  { %v449_v40 = vpop.f32.mrb[13].mxu0  ;;  %v458_v47 = vadd.f32 %v3105_v38, %v3764_v44 }
 0x10f   :  { %v729_v42 = vadd.f32 %v728_v37, %v666_v36  ;;  %v450_v43 = vadd.f32 %v3764_v44, %v449_v40  ;;  %v3106_v45 = vpop.f32.mrb[14].mxu0 }
 0x110   :  { %v452_v46 = vpop.f32.mrb[15].mxu0  ;;  %v461_v52 = vadd.f32 %v3106_v45, %v3764_v44  ;;  %v670_v54 = vmax.f32 %v458_v47, 0.0 }
 0x111   :  { %v668_v48 = vmax.f32 %v450_v43, 0.0  ;;  %v730_v49 = vadd.f32 %v729_v42, %v667_v41  ;;  %v453_v50 = vadd.f32 %v3764_v44, %v452_v46 }
 0x112   :  { %v671_v58 = vmax.f32 %v461_v52, 0.0 }
 0x113   :  { %v731_v51 = vadd.f32 %v730_v49, %v668_v48  ;;  %v669_v53 = vmax.f32 %v453_v50, 0.0  ;;  %v3323_v50 = vld [vmem:[%s4494_s5 + $0xc8] ss:$12 sps:$4 sm:$0xff]  }
 0x114   :  { %2982 = vmatprep.subr.bf16.mxu0 %v3323_v50 }
 0x115   :  { %v732_v55 = vadd.f32 %v731_v51, %v669_v53  ;;  %v3109_v56 = vpop.f32.mrb[16].mxu0  ;;  %v3324_v51 = vld [vmem:[%s4494_s5 + $0x8] ss:$12 sps:$4 sm:$0xff]  }
 0x116   :  { %v465_v57 = vpop.f32.mrb[17].mxu0  ;;  %v474_v63 = vadd.f32 %v3109_v56, %v3764_v44  ;;  %v3325_v56 = vld [vmem:[%s4494_s5 + $0xe0] ss:$12 sps:$4 sm:$0xff]   ;;  %2983 = vmatpush3.bf16.msra.mxu0 %v3324_v51 }
 0x117   :  { %v733_v59 = vadd.f32 %v732_v55, %v670_v54  ;;  %v466_v60 = vadd.f32 %v3764_v44, %v465_v57  ;;  %v3110_v61 = vpop.f32.mrb[18].mxu0  ;;  %2984 = vmatprep.subr.bf16.mxu0 %v3325_v56 }
 0x118   :  { %v468_v62 = vpop.f32.mrb[19].mxu0  ;;  %v477_v4 = vadd.f32 %v3110_v61, %v3764_v44  ;;  %v674_v6 = vmax.f32 %v474_v63, 0.0  ;;  %v3330_v61 = vld [vmem:[%s4494_s5 + $0xf8] ss:$12 sps:$4 sm:$0xff]  }
 0x119   :  { %v672_v0 = vmax.f32 %v466_v60, 0.0  ;;  %v734_v1 = vadd.f32 %v733_v59, %v671_v58  ;;  %v469_v2 = vadd.f32 %v3764_v44, %v468_v62  ;;  %v3326_v60 = vld [vmem:[%s4494_s5 + $0x20] ss:$12 sps:$4 sm:$0xff]  }
 0x11a   :  { %v675_v10 = vmax.f32 %v477_v4, 0.0  ;;  %2985 = vmatpush3.bf16.msra.mxu0 %v3326_v60 }
 0x11b   :  { %v735_v3 = vadd.f32 %v734_v1, %v672_v0  ;;  %v673_v5 = vmax.f32 %v469_v2, 0.0  ;;  %2986 = vmatprep.subr.bf16.mxu0 %v3330_v61 }
 0x11d   :  { %v736_v7 = vadd.f32 %v735_v3, %v673_v5  ;;  %v3113_v8 = vpop.f32.mrb[20].mxu0 }
 0x11e   :  { %v481_v9 = vpop.f32.mrb[21].mxu0  ;;  %v490_v16 = vadd.f32 %v3113_v8, %v3764_v44 }
 0x11f   :  { %v737_v11 = vadd.f32 %v736_v7, %v674_v6  ;;  %v482_v12 = vadd.f32 %v3764_v44, %v481_v9  ;;  %v3114_v14 = vpop.f32.mrb[22].mxu0  ;;  %v3331_v6 = vld [vmem:[%s4494_s5 + $0x38] ss:$12 sps:$4 sm:$0xff]  }
 0x120   :  { %v484_v15 = vpop.f32.mrb[23].mxu0  ;;  %v493_v21 = vadd.f32 %v3114_v14, %v3764_v44  ;;  %v678_v23 = vmax.f32 %v490_v16, 0.0  ;;  %2987 = vmatpush3.bf16.msra.mxu0 %v3331_v6 }
 0x121   :  { %v676_v17 = vmax.f32 %v482_v12, 0.0  ;;  %v738_v18 = vadd.f32 %v737_v11, %v675_v10  ;;  %v485_v19 = vadd.f32 %v3764_v44, %v484_v15 }
 0x122   :  { %v679_v27 = vmax.f32 %v493_v21, 0.0 }
 0x123   :  { %v739_v20 = vadd.f32 %v738_v18, %v676_v17  ;;  %v677_v22 = vmax.f32 %v485_v19, 0.0 }
 0x125   :  { %v740_v24 = vadd.f32 %v739_v20, %v677_v22  ;;  %v3117_v25 = vpop.f32.mrb[24].mxu0 }
 0x126   :  { %v497_v26 = vpop.f32.mrb[25].mxu0  ;;  %v506_v32 = vadd.f32 %v3117_v25, %v3764_v44 }
 0x127   :  { %v741_v28 = vadd.f32 %v740_v24, %v678_v23  ;;  %v498_v29 = vadd.f32 %v3764_v44, %v497_v26  ;;  %v3118_v30 = vpop.f32.mrb[26].mxu0 }
 0x128   :  { %v500_v31 = vpop.f32.mrb[27].mxu0  ;;  %v509_v37 = vadd.f32 %v3118_v30, %v3764_v44  ;;  %v682_v40 = vmax.f32 %v506_v32, 0.0 }
 0x129   :  { %v680_v33 = vmax.f32 %v498_v29, 0.0  ;;  %v742_v34 = vadd.f32 %v741_v28, %v679_v27  ;;  %v501_v35 = vadd.f32 %v3764_v44, %v500_v31  ;;  %v3344_v28 = vld [vmem:[%s4494_s5 + $0x110] ss:$12 sps:$4 sm:$0xff]  }
 0x12a   :  { %v683_v45 = vmax.f32 %v509_v37, 0.0  ;;  %v3345_v29 = vld [vmem:[%s4494_s5 + $0x50] ss:$12 sps:$4 sm:$0xff]   ;;  %2988 = vmatprep.subr.bf16.mxu0 %v3344_v28 }
 0x12b   :  { %v743_v36 = vadd.f32 %v742_v34, %v680_v33  ;;  %v681_v38 = vmax.f32 %v501_v35, 0.0  ;;  %2989 = vmatpush3.bf16.msra.mxu0 %v3345_v29 }
 0x12d   :  { %v744_v41 = vadd.f32 %v743_v36, %v681_v38  ;;  %v3121_v42 = vpop.f32.mrb[28].mxu0 }
 0x12e   :  { %v513_v43 = vpop.f32.mrb[29].mxu0  ;;  %v522_v52 = vadd.f32 %v3121_v42, %v3764_v44 }
 0x12f   :  { %v745_v46 = vadd.f32 %v744_v41, %v682_v40  ;;  %v514_v47 = vadd.f32 %v3764_v44, %v513_v43  ;;  %v3122_v48 = vpop.f32.mrb[30].mxu0 }
 0x130   :  { %v516_v49 = vpop.f32.mrb[31].mxu0  ;;  %v525_v58 = vadd.f32 %v3122_v48, %v3764_v44  ;;  %v686_v62 = vmax.f32 %v522_v52, 0.0 }
 0x131   :  { %v684_v53 = vmax.f32 %v514_v47, 0.0  ;;  %v746_v54 = vadd.f32 %v745_v46, %v683_v45  ;;  %v517_v55 = vadd.f32 %v3764_v44, %v516_v49 }
 0x132   :  { %v687_v2 = vmax.f32 %v525_v58, 0.0 }
 0x133   :  { %v747_v57 = vadd.f32 %v746_v54, %v684_v53  ;;  %v685_v59 = vmax.f32 %v517_v55, 0.0 }
 0x135   :  { %v748_v63 = vadd.f32 %v747_v57, %v685_v59  ;;  %v3125_v0 = vpop.f32.mrb[32].mxu0 }
 0x136   :  { %v529_v1 = vpop.f32.mrb[33].mxu0  ;;  %v538_v9 = vadd.f32 %v3125_v0, %v3764_v44  ;;  %v3358_v0 = vld [vmem:[%s4494_s5 + $0x128] ss:$12 sps:$4 sm:$0xff]  }
 0x137   :  { %v749_v3 = vadd.f32 %v748_v63, %v686_v62  ;;  %v530_v4 = vadd.f32 %v3764_v44, %v529_v1  ;;  %v3126_v5 = vpop.f32.mrb[34].mxu0  ;;  %v3359_v1 = vld [vmem:[%s4494_s5 + $0x68] ss:$12 sps:$4 sm:$0xff]   ;;  %2990 = vmatprep.subr.bf16.mxu0 %v3358_v0 }
 0x138   :  { %v532_v7 = vpop.f32.mrb[35].mxu0  ;;  %v541_v12 = vadd.f32 %v3126_v5, %v3764_v44  ;;  %v690_v15 = vmax.f32 %v538_v9, 0.0  ;;  %2991 = vmatpush3.bf16.msra.mxu0 %v3359_v1 }
 0x139   :  { %v3855_v8 = vadd.f32 %v749_v3, %v687_v2  ;;  %v533_v10 = vadd.f32 %v3764_v44, %v532_v7  ;;  %v688_v11 = vmax.f32 %v530_v4, 0.0 }
 0x13a   :  { %v691_v19 = vmax.f32 %v541_v12, 0.0 }
 0x13b   :  { %v689_v14 = vmax.f32 %v533_v10, 0.0 }
 0x13d   :  { %v757_v16 = vadd.f32 %v689_v14, %v688_v11  ;;  %v3129_v17 = vpop.f32.mrb[36].mxu0 }
 0x13e   :  { %v545_v18 = vpop.f32.mrb[37].mxu0  ;;  %v554_v24 = vadd.f32 %v3129_v17, %v3764_v44 }
 0x13f   :  { %v758_v20 = vadd.f32 %v757_v16, %v690_v15  ;;  %v546_v21 = vadd.f32 %v3764_v44, %v545_v18  ;;  %v3130_v22 = vpop.f32.mrb[38].mxu0 }
 0x140   :  { %v548_v23 = vpop.f32.mrb[39].mxu0  ;;  %v557_v31 = vadd.f32 %v3130_v22, %v3764_v44  ;;  %v694_v33 = vmax.f32 %v554_v24, 0.0 }
 0x141   :  { %v692_v25 = vmax.f32 %v546_v21, 0.0  ;;  %v759_v26 = vadd.f32 %v758_v20, %v691_v19  ;;  %v549_v27 = vadd.f32 %v3764_v44, %v548_v23 }
 0x142   :  { %v695_v37 = vmax.f32 %v557_v31, 0.0 }
 0x143   :  { %v760_v30 = vadd.f32 %v759_v26, %v692_v25  ;;  %v693_v32 = vmax.f32 %v549_v27, 0.0 }
 0x145   :  { %v761_v34 = vadd.f32 %v760_v30, %v693_v32  ;;  %v3133_v35 = vpop.f32.mrb[40].mxu0 }
 0x146   :  { %v561_v36 = vpop.f32.mrb[41].mxu0  ;;  %v570_v43 = vadd.f32 %v3133_v35, %v3764_v44 }
 0x147   :  { %v762_v38 = vadd.f32 %v761_v34, %v694_v33  ;;  %v562_v40 = vadd.f32 %v3764_v44, %v561_v36  ;;  %v3134_v41 = vpop.f32.mrb[42].mxu0  ;;  %v3372_v36 = vld [vmem:[%s4494_s5 + $0x140] ss:$12 sps:$4 sm:$0xff]  }
 0x148   :  { %v564_v42 = vpop.f32.mrb[43].mxu0  ;;  %v573_v49 = vadd.f32 %v3134_v41, %v3764_v44  ;;  %v698_v51 = vmax.f32 %v570_v43, 0.0  ;;  %2992 = vmatprep.subr.bf16.mxu0 %v3372_v36 }
 0x149   :  { %v696_v45 = vmax.f32 %v562_v40, 0.0  ;;  %v763_v46 = vadd.f32 %v762_v38, %v695_v37  ;;  %v565_v47 = vadd.f32 %v3764_v44, %v564_v42  ;;  %v3373_v37 = vld [vmem:[%s4494_s5 + $0x80] ss:$12 sps:$4 sm:$0xff]  }
 0x14a   :  { %v699_v55 = vmax.f32 %v573_v49, 0.0  ;;  %2993 = vmatpush3.bf16.msra.mxu0 %v3373_v37  ;;  %v3316_v37 = vld [vmem:[%s4492_s3 + $0x20] ss:$12 sps:$4 sm:$0xff]  }
 0x14b   :  { %v764_v48 = vadd.f32 %v763_v46, %v696_v45  ;;  %v697_v50 = vmax.f32 %v565_v47, 0.0 }
 0x14d   :  { %v765_v52 = vadd.f32 %v764_v48, %v697_v50  ;;  %v3137_v53 = vpop.f32.mrb[44].mxu0 }
 0x14e   :  { %v577_v54 = vpop.f32.mrb[45].mxu0  ;;  %v586_v60 = vadd.f32 %v3137_v53, %v3764_v44 }
 0x14f   :  { %v766_v56 = vadd.f32 %v765_v52, %v698_v51  ;;  %v578_v57 = vadd.f32 %v3764_v44, %v577_v54  ;;  %v3138_v58 = vpop.f32.mrb[46].mxu0 }
 0x150   :  { %v580_v59 = vpop.f32.mrb[47].mxu0  ;;  %v589_v3 = vadd.f32 %v3138_v58, %v3764_v44  ;;  %v702_v5 = vmax.f32 %v586_v60, 0.0 }
 0x151   :  { %v700_v61 = vmax.f32 %v578_v57, 0.0  ;;  %v767_v62 = vadd.f32 %v766_v56, %v699_v55  ;;  %v581_v63 = vadd.f32 %v3764_v44, %v580_v59  ;;  %v751_v56 = vrot.slane %v3855_v8, 4 }
 0x152   :  { %v703_v10 = vmax.f32 %v589_v3, 0.0 }
 0x153   :  { %v768_v2 = vadd.f32 %v767_v62, %v700_v61  ;;  %v701_v4 = vmax.f32 %v581_v63, 0.0  ;;  %v752_v0 = vadd.f32 %v751_v56, %v3855_v8  ;;  %v3348_v56 = vld [vmem:[%s4494_s5 + $0x7c] ss:$12 sps:$4 sm:$0xff]  }
 0x155   :  { %v769_v6 = vadd.f32 %v768_v2, %v701_v4  ;;  %v3141_v7 = vpop.f32.mrb[48].mxu0 }
 0x156   :  { %v593_v9 = vpop.f32.mrb[49].mxu0  ;;  %v602_v16 = vadd.f32 %v3141_v7, %v3764_v44 }
 0x157   :  { %v770_v11 = vadd.f32 %v769_v6, %v702_v5  ;;  %v594_v12 = vadd.f32 %v3764_v44, %v593_v9  ;;  %v3142_v14 = vpop.f32.mrb[50].mxu0 }
 0x158   :  { %v596_v15 = vpop.f32.mrb[51].mxu0  ;;  %v605_v21 = vadd.f32 %v3142_v14, %v3764_v44  ;;  %v706_v23 = vmax.f32 %v602_v16, 0.0 }
 0x159   :  { %v704_v17 = vmax.f32 %v594_v12, 0.0  ;;  %v771_v18 = vadd.f32 %v770_v11, %v703_v10  ;;  %v597_v19 = vadd.f32 %v3764_v44, %v596_v15  ;;  %v753_v11 = vrot.slane %v752_v0, 2 }
 0x15a   :  { %v707_v27 = vmax.f32 %v605_v21, 0.0 }
 0x15b   :  { %v772_v20 = vadd.f32 %v771_v18, %v704_v17  ;;  %v705_v22 = vmax.f32 %v597_v19, 0.0  ;;  %v754_v8 = vadd.f32 %v753_v11, %v752_v0  ;;  %v3362_v0 = vld [vmem:[%s4494_s5 + $0xdc] ss:$12 sps:$4 sm:$0xff]   ;;  %v3379_v11 = vld [vmem:[%s4494_s5 + $0x154] ss:$12 sps:$4 sm:$0xff]  }
 0x15d   :  { %v773_v24 = vadd.f32 %v772_v20, %v705_v22  ;;  %v3145_v25 = vpop.f32.mrb[52].mxu0  ;;  %v755_v22 = vrot.slane %v754_v8, 1 }
 0x15e   :  { %v609_v26 = vpop.f32.mrb[53].mxu0  ;;  %v618_v32 = vadd.f32 %v3145_v25, %v3764_v44 }
 0x15f   :  { %v774_v28 = vadd.f32 %v773_v24, %v706_v23  ;;  %v610_v29 = vadd.f32 %v3764_v44, %v609_v26  ;;  %v3146_v30 = vpop.f32.mrb[54].mxu0  ;;  %v756_v25 = vadd.f32 %v755_v22, %v754_v8  ;;  %v3386_v8 = vld [vmem:[%s4494_s5 + $0xb0] ss:$12 sps:$4 sm:$0xff]  }
 0x160   :  { %v612_v31 = vpop.f32.mrb[55].mxu0  ;;  %v621_v40 = vadd.f32 %v3146_v30, %v3764_v44  ;;  %v710_v42 = vmax.f32 %v618_v32, 0.0 }
 0x161   :  { %v708_v33 = vmax.f32 %v610_v29, 0.0  ;;  %v775_v34 = vadd.f32 %v774_v28, %v707_v27  ;;  %v613_v35 = vadd.f32 %v3764_v44, %v612_v31  ;;  %v794_v28 = vmul.f32 0.00390625, %v756_v25 }
 0x162   :  { %v711_v47 = vmax.f32 %v621_v40, 0.0  ;;  %v3318_v40 = vld [vmem:[%s4492_s3 + $0x50] ss:$12 sps:$4 sm:$0xff]  }
 0x163   :  { %v776_v38 = vadd.f32 %v775_v34, %v708_v33  ;;  %v709_v41 = vmax.f32 %v613_v35, 0.0  ;;  %v796_v31 = vpack.c.bf16 %v794_v28, %v794_v28  ;;  %v3315_v35 = vld [vmem:[%s4492_s3 + $0x8] ss:$12 sps:$4 sm:$0xff]  }
 0x165   :  { %v777_v43 = vadd.f32 %v776_v38, %v709_v41  ;;  %v3149_v45 = vpop.f32.mrb[56].mxu0  ;;  %v3317_v38 = vld [vmem:[%s4492_s3 + $0x38] ss:$12 sps:$4 sm:$0xff]   ;;  %v3319_v41 = vld [vmem:[%s4492_s3 + $0x68] ss:$12 sps:$4 sm:$0xff]  }
 0x166   :  { %v625_v46 = vpop.f32.mrb[57].mxu0  ;;  %v634_v52 = vadd.f32 %v3149_v45, %v3764_v44  ;;  %v3322_v45 = vld [vmem:[%s4492_s3 + $0xb0] ss:$12 sps:$4 sm:$0xff]  }
 0x167   :  { %v778_v48 = vadd.f32 %v777_v43, %v710_v42  ;;  %v626_v49 = vadd.f32 %v3764_v44, %v625_v46  ;;  %v3150_v50 = vpop.f32.mrb[58].mxu0  ;;  %v3320_v42 = vld [vmem:[%s4492_s3 + $0x80] ss:$12 sps:$4 sm:$0xff]   ;;  %v3321_v43 = vld [vmem:[%s4492_s3 + $0x98] ss:$12 sps:$4 sm:$0xff]  }
 0x168   :  { %v628_v51 = vpop.f32.mrb[59].mxu0  ;;  %v637_v58 = vadd.f32 %v3150_v50, %v3764_v44  ;;  %v714_v60 = vmax.f32 %v634_v52, 0.0  ;;  %v3329_v46 = vld [vmem:[%s4494_s5 + $0x4] ss:$12 sps:$4 sm:$0xff]   ;;  %v3337_v50 = vld [vmem:[%s4494_s5 + $0x34] ss:$12 sps:$4 sm:$0xff]  }
 0x169   :  { %v712_v53 = vmax.f32 %v626_v49, 0.0  ;;  %v779_v54 = vadd.f32 %v778_v48, %v711_v47  ;;  %v629_v55 = vadd.f32 %v3764_v44, %v628_v51  ;;  %v3327_v47 = vld [vmem:[%s4494_s5] ss:$12 sps:$4 sm:$0xff]   ;;  %v3334_v48 = vld [vmem:[%s4494_s5 + $0x1c] ss:$12 sps:$4 sm:$0xff]  }
 0x16a   :  { %v715_v1 = vmax.f32 %v637_v58, 0.0  ;;  %v3332_v49 = vld [vmem:[%s4494_s5 + $0x18] ss:$12 sps:$4 sm:$0xff]   ;;  %v3335_v51 = vld [vmem:[%s4494_s5 + $0x30] ss:$12 sps:$4 sm:$0xff]  }
 0x16b   :  { %v780_v57 = vadd.f32 %v779_v54, %v712_v53  ;;  %v713_v59 = vmax.f32 %v629_v55, 0.0  ;;  %v3340_v52 = vld [vmem:[%s4494_s5 + $0x4c] ss:$12 sps:$4 sm:$0xff]   ;;  %v3338_v53 = vld [vmem:[%s4494_s5 + $0x48] ss:$12 sps:$4 sm:$0xff]  }
 0x16c   :  { %v3343_v54 = vld [vmem:[%s4494_s5 + $0x64] ss:$12 sps:$4 sm:$0xff]   ;;  %v3341_v55 = vld [vmem:[%s4494_s5 + $0x60] ss:$12 sps:$4 sm:$0xff]  }
 0x16d   :  { %v781_v61 = vadd.f32 %v780_v57, %v713_v59  ;;  %v3153_v62 = vpop.f32.mrb[60].mxu0  ;;  %v3346_v57 = vld [vmem:[%s4494_s5 + $0x78] ss:$12 sps:$4 sm:$0xff]   ;;  %v3351_v58 = vld [vmem:[%s4494_s5 + $0x94] ss:$12 sps:$4 sm:$0xff]  }
 0x16e   :  { %v641_v63 = vpop.f32.mrb[61].mxu0  ;;  %v650_v6 = vadd.f32 %v3153_v62, %v3764_v44  ;;  %v3349_v59 = vld [vmem:[%s4494_s5 + $0x90] ss:$12 sps:$4 sm:$0xff]  }
 0x16f   :  { %v782_v2 = vadd.f32 %v781_v61, %v714_v60  ;;  %v642_v3 = vadd.f32 %v3764_v44, %v641_v63  ;;  %v3154_v4 = vpop.f32.mrb[62].mxu0  ;;  %v3354_v60 = vld [vmem:[%s4494_s5 + $0xac] ss:$12 sps:$4 sm:$0xff]   ;;  %v3352_v61 = vld [vmem:[%s4494_s5 + $0xa8] ss:$12 sps:$4 sm:$0xff]  }
 0x170   :  { %v644_v5 = vpop.f32.mrb[63].mxu0  ;;  %v653_v14 = vadd.f32 %v3154_v4, %v3764_v44  ;;  %v718_v16 = vmax.f32 %v650_v6, 0.0  ;;  %v3357_v62 = vld [vmem:[%s4494_s5 + $0xc4] ss:$12 sps:$4 sm:$0xff]   ;;  %v3355_v63 = vld [vmem:[%s4494_s5 + $0xc0] ss:$12 sps:$4 sm:$0xff]  }
 0x171   :  { %v716_v7 = vmax.f32 %v642_v3, 0.0  ;;  %v783_v9 = vadd.f32 %v782_v2, %v715_v1  ;;  %v645_v10 = vadd.f32 %v3764_v44, %v644_v5  ;;  %v849_v44 = vunpack.c.l.b16 %v796_v31  ;;  %v3360_v1 = vld [vmem:[%s4494_s5 + $0xd8] ss:$12 sps:$4 sm:$0xff]   ;;  %v3365_v2 = vld [vmem:[%s4494_s5 + $0xf4] ss:$12 sps:$4 sm:$0xff]  }
 0x172   :  { %v719_v18 = vmax.f32 %v653_v14, 0.0  ;;  %v3363_v3 = vld [vmem:[%s4494_s5 + $0xf0] ss:$12 sps:$4 sm:$0xff]   ;;  %v3368_v4 = vld [vmem:[%s4494_s5 + $0x10c] ss:$12 sps:$4 sm:$0xff]  }
 0x173   :  { %v784_v12 = vadd.f32 %v783_v9, %v716_v7  ;;  %v717_v15 = vmax.f32 %v645_v10, 0.0  ;;  %v3366_v5 = vld [vmem:[%s4494_s5 + $0x108] ss:$12 sps:$4 sm:$0xff]   ;;  %v3371_v6 = vld [vmem:[%s4494_s5 + $0x124] ss:$12 sps:$4 sm:$0xff]  }
 0x174   :  { %v3369_v7 = vld [vmem:[%s4494_s5 + $0x120] ss:$12 sps:$4 sm:$0xff]   ;;  %v3376_v9 = vld [vmem:[%s4494_s5 + $0x13c] ss:$12 sps:$4 sm:$0xff]   ;;  %v3374_v10 = vld [vmem:[%s4494_s5 + $0x138] ss:$12 sps:$4 sm:$0xff]  }
 0x175   :  { %v785_v17 = vadd.f32 %v784_v12, %v717_v15  ;;  %v3380_v12 = vld [vmem:[%s4494_s5 + $0x158] ss:$12 sps:$4 sm:$0xff]   ;;  %v3377_v15 = vld [vmem:[%s4494_s5 + $0x150] ss:$12 sps:$4 sm:$0xff]  }
 0x176   :  { %v3381_v14 = vld [vmem:[%s4494_s5 + $0x98] ss:$12 sps:$4 sm:$0xff]   ;;  %2994 = vmatprep.subr.bf16.mxu0 %v3380_v12  ;;  %v3425_v12 = vld [vmem:[%s4496_s7 + $0x30] ss:$12 sps:$4 sm:$0xff]  }
 0x177   :  { %v786_v19 = vadd.f32 %v785_v17, %v718_v16  ;;  %2995 = vmatpush3.bf16.msra.mxu0 %v3381_v14  ;;  %v3384_v16 = vld [vmem:[%s4494_s5 + $0x16c] ss:$12 sps:$4 sm:$0xff]   ;;  %v3385_v17 = vld [vmem:[%s4494_s5 + $0x170] ss:$12 sps:$4 sm:$0xff]  }
 0x178   :  { %2996 = vmatprep.subr.bf16.mxu0 %v3385_v17  ;;  %v3430_v14 = vld [vmem:[%s4496_s7 + $0x4c] ss:$12 sps:$4 sm:$0xff]  }
 0x179   :  { %v787_v20 = vadd.f32 %v786_v19, %v719_v18  ;;  %v3382_v18 = vld [vmem:[%s4494_s5 + $0x168] ss:$12 sps:$4 sm:$0xff]   ;;  %v3389_v19 = vld [vmem:[%s4494_s5 + $0x184] ss:$12 sps:$4 sm:$0xff]   ;;  %v3431_v17 = vld [vmem:[%s4496_s7 + $0x60] ss:$12 sps:$4 sm:$0xff]  }
 0x17b   :  { %v788_v21 = vrot.slane %v787_v20, 4  ;;  %2997 = vmatpush3.bf16.msra.mxu0 %v3386_v8  ;;  %v3436_v8 = vld [vmem:[%s4496_s7 + $0x7c] ss:$12 sps:$4 sm:$0xff]  }
 0x17c   :  { %3175 = vmatprep.subr.bf16.mxu0 %v3566_v39 }
 0x17d   :  { %v789_v23 = vadd.f32 %v788_v21, %v787_v20  ;;  %v832_v20 = vlaneseq }
 0x17f   :  { %v790_v24 = vrot.slane %v789_v23, 2  ;;  %v833_v21 = vshrl.u32 %v832_v20, 7  ;;  %v3437_v20 = vld [vmem:[%s4496_s7 + $0x90] ss:$12 sps:$4 sm:$0xff]  }
 0x181   :  { %v791_v26 = vadd.f32 %v790_v24, %v789_v23  ;;  %v4053_v22 = vsub.s32 0, %v833_v21  ;;  %v4058_v23 = vld [vmem:[%s4493_s4] sm:$0x7]  ;;  %v4060_v24 = vsub.s32 1, %v833_v21 }
 0x183   :  { %v792_v27 = vrot.slane %v791_v26, 1  ;;  %v835_v25 = vrot.slane %v4058_v23, %v4053_v22 }
 0x185   :  { %v793_v29 = vadd.f32 %v792_v27, %v791_v26  ;;  %v839_v26 = vrot.slane %v4058_v23, %v4060_v24 }
 0x187   :  { %v795_v30 = vmul.f32 0.00390625, %v793_v29 }
 0x189   :  { %v797_v32 = vpack.c.bf16 %v795_v30, %v795_v30 }
 0x18b   :  { %v850_v33 = vunpack.c.l.b16 %v797_v32 }
 0x18d   :  { %v852_v34 = vsel %vm851_vm0, %v850_v33, %v849_v44 }
 0x18e   :  { %v853_v36 = vpack.c.b16 %v852_v34, %v852_v34 }
 0x190   :  { %1016 = vmatmul.mubr.bf16.vlgmr.msra.gmra.mrb[0].mxu1 %v853_v36 }
 0x191   :  { %3156 = vmatpush3.bf16.msra.mxu1 %v3315_v35  ;;  %3171 = vmatprep.mubr.msk.bf16.mxu1 %vm3567_vm1, %v3566_v39  ;;  %v3387_v35 = vld [vmem:[%s4494_s5 + $0x180] ss:$12 sps:$4 sm:$0xff]  }
 0x192   :  { %3157 = vmatprep.subr.bf16.mxu1 %v3566_v39 }
 0x195   :  { %3158 = vmatpush3.bf16.msra.mxu1 %v3316_v37 }
 0x196   :  { %3159 = vmatprep.subr.bf16.mxu1 %v3566_v39 }
 0x199   :  { %3160 = vmatpush3.bf16.msra.mxu1 %v3317_v38  ;;  %v3393_v38 = vld [vmem:[%s4494_s5 + $0x19c] ss:$12 sps:$4 sm:$0xff]  }
 0x19a   :  { %3161 = vmatprep.subr.bf16.mxu1 %v3566_v39 }
 0x19d   :  { %3162 = vmatpush3.bf16.msra.mxu1 %v3318_v40  ;;  %v3391_v40 = vld [vmem:[%s4494_s5 + $0x198] ss:$12 sps:$4 sm:$0xff]  }
 0x19e   :  { %3163 = vmatprep.subr.bf16.mxu1 %v3566_v39 }
 0x1a1   :  { %3164 = vmatpush3.bf16.msra.mxu1 %v3319_v41  ;;  %v3394_v41 = vld [vmem:[%s4494_s5 + $0x1a0] ss:$12 sps:$4 sm:$0xff]  }
 0x1a2   :  { %3165 = vmatprep.subr.bf16.mxu1 %v3566_v39 }
 0x1a5   :  { %3166 = vmatpush3.bf16.msra.mxu1 %v3320_v42  ;;  %v3397_v42 = vld [vmem:[%s4494_s5 + $0x1b4] ss:$12 sps:$4 sm:$0xff]  }
 0x1a6   :  { %3167 = vmatprep.subr.bf16.mxu1 %v3566_v39 }
 0x1a9   :  { %3168 = vmatpush3.bf16.msra.mxu1 %v3321_v43  ;;  %v3395_v43 = vld [vmem:[%s4494_s5 + $0x1b0] ss:$12 sps:$4 sm:$0xff]  }
 0x1aa   :  { %3169 = vmatprep.subr.bf16.mxu1 %v3566_v39 }
 0x1ad   :  { %3170 = vmatpush3.bf16.msra.mxu1 %v3322_v45  ;;  %v3398_v45 = vld [vmem:[%s4494_s5 + $0x1b8] ss:$12 sps:$4 sm:$0xff]  }
 0x1ae   :  { %1567 = vmatprep.subr.bf16.mxu1 %v3329_v46  ;;  %v3401_v46 = vld [vmem:[%s4494_s5 + $0x1cc] ss:$12 sps:$4 sm:$0xff]  }
 0x1b0   :  { %3172 = vmatmul.mubr.bf16.vlgmr.msra.gmra.mrb[4].mxu1 %v853_v36  ;;  %v3390_v36 = vld [vmem:[%s4494_s5 + $0x188] ss:$12 sps:$4 sm:$0xff]  }
 0x1b1   :  { %1568 = vmatpush1.bf16.msra.mxu1 %v3327_v47  ;;  %v3399_v47 = vld [vmem:[%s4494_s5 + $0x1c8] ss:$12 sps:$4 sm:$0xff]  }
 0x1b2   :  { %1569 = vmatprep.subr.bf16.mxu1 %v3334_v48  ;;  %v3402_v48 = vld [vmem:[%s4494_s5 + $0x1d0] ss:$12 sps:$4 sm:$0xff]  }
 0x1b5   :  { %1570 = vmatpush1.bf16.msra.mxu1 %v3332_v49  ;;  %v3405_v49 = vld [vmem:[%s4494_s5 + $0x1e4] ss:$12 sps:$4 sm:$0xff]  }
 0x1b6   :  { %1571 = vmatprep.subr.bf16.mxu1 %v3337_v50  ;;  %v3403_v50 = vld [vmem:[%s4494_s5 + $0x1e0] ss:$12 sps:$4 sm:$0xff]  }
 0x1b9   :  { %1572 = vmatpush1.bf16.msra.mxu1 %v3335_v51  ;;  %v3406_v51 = vld [vmem:[%s4494_s5 + $0x1e8] ss:$12 sps:$4 sm:$0xff]  }
 0x1ba   :  { %1573 = vmatprep.subr.bf16.mxu1 %v3340_v52  ;;  %v3409_v52 = vld [vmem:[%s4494_s5 + $0x1fc] ss:$12 sps:$4 sm:$0xff]  }
 0x1bd   :  { %1574 = vmatpush1.bf16.msra.mxu1 %v3338_v53  ;;  %v4118_v53 = vsub.s32 2, %v833_v21  ;;  %v3442_v21 = vld [vmem:[%s4496_s7 + $0xac] ss:$12 sps:$4 sm:$0xff]  }
 0x1be   :  { %1575 = vmatprep.subr.bf16.mxu1 %v3343_v54  ;;  %v3407_v54 = vld [vmem:[%s4494_s5 + $0x1f8] ss:$12 sps:$4 sm:$0xff]  }
 0x1c1   :  { %1576 = vmatpush1.bf16.msra.mxu1 %v3341_v55  ;;  %v3410_v55 = vld [vmem:[%s4494_s5 + $0x200] ss:$12 sps:$4 sm:$0xff]  }
 0x1c2   :  { %1577 = vmatprep.subr.bf16.mxu1 %v3348_v56  ;;  %v3413_v56 = vld [vmem:[%s4494_s5 + $0x214] ss:$12 sps:$4 sm:$0xff]  }
 0x1c5   :  { %1578 = vmatpush1.bf16.msra.mxu1 %v3346_v57  ;;  %v843_v57 = vrot.slane %v4058_v23, %v4118_v53  ;;  %v3440_v23 = vld [vmem:[%s4496_s7 + $0xa8] ss:$12 sps:$4 sm:$0xff]  }
 0x1c6   :  { %1579 = vmatprep.subr.bf16.mxu1 %v3351_v58  ;;  %v3411_v58 = vld [vmem:[%s4494_s5 + $0x210] ss:$12 sps:$4 sm:$0xff]  }
 0x1c9   :  { %1580 = vmatpush1.bf16.msra.mxu1 %v3349_v59  ;;  %v3414_v59 = vld [vmem:[%s4494_s5 + $0x218] ss:$12 sps:$4 sm:$0xff]  }
 0x1ca   :  { %1581 = vmatprep.subr.bf16.mxu1 %v3354_v60  ;;  %v3417_v60 = vld [vmem:[%s4494_s5 + $0x22c] ss:$12 sps:$4 sm:$0xff]  }
 0x1cd   :  { %1582 = vmatpush1.bf16.msra.mxu1 %v3352_v61 }
 0x1ce   :  { %1583 = vmatprep.subr.bf16.mxu1 %v3357_v62 }
 0x1d1   :  { %1584 = vmatpush1.bf16.msra.mxu1 %v3355_v63 }
 0x1d2   :  { %1585 = vmatprep.subr.bf16.mxu1 %v3362_v0 }
 0x1d5   :  { %1586 = vmatpush1.bf16.msra.mxu1 %v3360_v1  ;;  %v3415_v1 = vld [vmem:[%s4494_s5 + $0x228] ss:$12 sps:$4 sm:$0xff]  }
 0x1d6   :  { %1587 = vmatprep.subr.bf16.mxu1 %v3365_v2  ;;  %v3418_v2 = vld [vmem:[%s4494_s5 + $0x230] ss:$12 sps:$4 sm:$0xff]  }
 0x1d9   :  { %1588 = vmatpush1.bf16.msra.mxu1 %v3363_v3 }
 0x1da   :  { %1589 = vmatprep.subr.bf16.mxu1 %v3368_v4 }
 0x1dd   :  { %1590 = vmatpush1.bf16.msra.mxu1 %v3366_v5  ;;  %v3421_v5 = vld [vmem:[%s4496_s7 + $0x4] ss:$12 sps:$4 sm:$0xff]  }
 0x1de   :  { %1591 = vmatprep.subr.bf16.mxu1 %v3371_v6  ;;  %v3419_v6 = vld [vmem:[%s4496_s7] ss:$12 sps:$4 sm:$0xff]  }
 0x1e1   :  { %1592 = vmatpush1.bf16.msra.mxu1 %v3369_v7 }
 0x1e2   :  { %1593 = vmatprep.subr.bf16.mxu1 %v3376_v9  ;;  %v3424_v9 = vld [vmem:[%s4496_s7 + $0x1c] ss:$12 sps:$4 sm:$0xff]  }
 0x1e5   :  { %1594 = vmatpush1.bf16.msra.mxu1 %v3374_v10  ;;  %v3422_v10 = vld [vmem:[%s4496_s7 + $0x18] ss:$12 sps:$4 sm:$0xff]  }
 0x1e6   :  { %1595 = vmatprep.subr.bf16.mxu1 %v3379_v11  ;;  %v3427_v11 = vld [vmem:[%s4496_s7 + $0x34] ss:$12 sps:$4 sm:$0xff]  }
 0x1e9   :  { %1596 = vmatpush1.bf16.msra.mxu1 %v3377_v15  ;;  %v3428_v15 = vld [vmem:[%s4496_s7 + $0x48] ss:$12 sps:$4 sm:$0xff]  }
 0x1ea   :  { %1597 = vmatprep.subr.bf16.mxu1 %v3384_v16  ;;  %v3433_v16 = vld [vmem:[%s4496_s7 + $0x64] ss:$12 sps:$4 sm:$0xff]  }
 0x1ed   :  { %1598 = vmatpush1.bf16.msra.mxu1 %v3382_v18  ;;  %v3434_v18 = vld [vmem:[%s4496_s7 + $0x78] ss:$12 sps:$4 sm:$0xff]  }
 0x1ee   :  { %1608 = vmatprep.subr.bf16.mxu1 %v3389_v19  ;;  %v3439_v19 = vld [vmem:[%s4496_s7 + $0x94] ss:$12 sps:$4 sm:$0xff]  }
 0x263   :  { %v1017_v27 = vpop.f32.mrb[0].mxu1 }
 0x264   :  { %v1018_v28 = vadd.f32 %v1017_v27, %v835_v25  ;;  %v1019_v29 = vpop.f32.mrb[1].mxu1  ;;  %v3443_v25 = vld [vmem:[%s4496_s7 + $0xc0] ss:$12 sps:$4 sm:$0xff]   ;;  %v3446_v27 = vld [vmem:[%s4496_s7 + $0xc8] ss:$12 sps:$4 sm:$0xff]  }
 0x265   :  { %v1020_v30 = vadd.f32 %v1019_v29, %v839_v26  ;;  %v1021_v31 = vpop.f32.mrb[2].mxu1  ;;  %v3445_v26 = vld [vmem:[%s4496_s7 + $0xc4] ss:$12 sps:$4 sm:$0xff]   ;;  %v3450_v29 = vld [vmem:[%s4496_s7 + $0xdc] ss:$12 sps:$4 sm:$0xff]  }
 0x266   :  { %v1064_v32 = vmax.f32 %v1018_v28, 0.0  ;;  %v1022_v44 = vpop.f32.mrb[3].mxu1  ;;  %v3447_v28 = vld [vmem:[%s4496_s7 + $0x8] ss:$12 sps:$4 sm:$0xff]   ;;  %v3452_v31 = vld [vmem:[%s4496_s7 + $0x20] ss:$12 sps:$4 sm:$0xff]  }
 0x267   :  { %v1065_v33 = vmax.f32 %v1020_v30, 0.0  ;;  %v3451_v30 = vld [vmem:[%s4496_s7 + $0xe0] ss:$12 sps:$4 sm:$0xff]   ;;  %v3456_v44 = vld [vmem:[%s4496_s7 + $0xf8] ss:$12 sps:$4 sm:$0xff]  }
 0x268   :  { %v1067_v37 = vpack.c.bf16 %v1064_v32, %v1064_v32  ;;  %v3448_v32 = vld [vmem:[%s4496_s7 + $0xd8] ss:$12 sps:$4 sm:$0xff]  }
 0x269   :  { %v1068_v34 = vpack.c.bf16 %v1065_v33, %v1065_v33  ;;  %v3455_v33 = vld [vmem:[%s4496_s7 + $0xf4] ss:$12 sps:$4 sm:$0xff]  }
 0x26b   :  { %1599 = vmatprep.mubr.bf16.mxu1 %v1068_v34  ;;  %1681 = vmatprep.mubr.bf16.mxu0 %v1068_v34  ;;  %v3457_v34 = vld [vmem:[%s4496_s7 + $0x38] ss:$12 sps:$4 sm:$0xff]  }
 0x26c   :  { %1600 = vmatmul.mubr.bf16.vlgmr.msra.gmra.mrb[8].mxu1 %v1067_v37  ;;  %1682 = vmatmul.mubr.bf16.vlgmr.msra.gmra.mrb[64].mxu0 %v1067_v37  ;;  %v3460_v37 = vld [vmem:[%s4496_s7 + $0x10c] ss:$12 sps:$4 sm:$0xff]  }
 0x26d   :  { %1609 = vmatpush1.bf16.msra.mxu1 %v3387_v35  ;;  %3176 = vmatpush3.bf16.msra.mxu0 %v3390_v36  ;;  %v3453_v35 = vld [vmem:[%s4496_s7 + $0xf0] ss:$12 sps:$4 sm:$0xff]  }
 0x26e   :  { %1610 = vmatprep.subr.bf16.mxu1 %v3393_v38  ;;  %3177 = vmatprep.subr.bf16.mxu0 %v3566_v39  ;;  %v3461_v36 = vld [vmem:[%s4496_s7 + $0x110] ss:$12 sps:$4 sm:$0xff]  }
 0x26f   :  { %1640 = vmatprep.mubr.bf16.mxu1 %v3565_v13  ;;  %3191 = vmatprep.mubr.msk.bf16.mxu0 %vm3567_vm1, %v3566_v39  ;;  %v3462_v38 = vld [vmem:[%s4496_s7 + $0x50] ss:$12 sps:$4 sm:$0xff]  }
 0x271   :  { %1611 = vmatpush1.bf16.msra.mxu1 %v3391_v40  ;;  %3178 = vmatpush3.bf16.msra.mxu0 %v3394_v41  ;;  %v3458_v40 = vld [vmem:[%s4496_s7 + $0x108] ss:$12 sps:$4 sm:$0xff]  }
 0x272   :  { %1612 = vmatprep.subr.bf16.mxu1 %v3397_v42  ;;  %3179 = vmatprep.subr.bf16.mxu0 %v3566_v39  ;;  %v3466_v41 = vld [vmem:[%s4496_s7 + $0x128] ss:$12 sps:$4 sm:$0xff]   ;;  %v3465_v42 = vld [vmem:[%s4496_s7 + $0x124] ss:$12 sps:$4 sm:$0xff]  }
 0x275   :  { %1613 = vmatpush1.bf16.msra.mxu1 %v3395_v43  ;;  %3180 = vmatpush3.bf16.msra.mxu0 %v3398_v45  ;;  %v3467_v43 = vld [vmem:[%s4496_s7 + $0x68] ss:$12 sps:$4 sm:$0xff]   ;;  %v3463_v45 = vld [vmem:[%s4496_s7 + $0x120] ss:$12 sps:$4 sm:$0xff]  }
 0x276   :  { %1614 = vmatprep.subr.bf16.mxu1 %v3401_v46  ;;  %3181 = vmatprep.subr.bf16.mxu0 %v3566_v39  ;;  %v3471_v46 = vld [vmem:[%s4496_s7 + $0x140] ss:$12 sps:$4 sm:$0xff]  }
 0x279   :  { %1615 = vmatpush1.bf16.msra.mxu1 %v3399_v47  ;;  %3182 = vmatpush3.bf16.msra.mxu0 %v3402_v48  ;;  %v3470_v47 = vld [vmem:[%s4496_s7 + $0x13c] ss:$12 sps:$4 sm:$0xff]   ;;  %v3472_v48 = vld [vmem:[%s4496_s7 + $0x80] ss:$12 sps:$4 sm:$0xff]  }
 0x27a   :  { %1616 = vmatprep.subr.bf16.mxu1 %v3405_v49  ;;  %3183 = vmatprep.subr.bf16.mxu0 %v3566_v39  ;;  %v3468_v49 = vld [vmem:[%s4496_s7 + $0x138] ss:$12 sps:$4 sm:$0xff]  }
 0x27d   :  { %1617 = vmatpush1.bf16.msra.mxu1 %v3403_v50  ;;  %3184 = vmatpush3.bf16.msra.mxu0 %v3406_v51  ;;  %v3476_v50 = vld [vmem:[%s4496_s7 + $0x158] ss:$12 sps:$4 sm:$0xff]   ;;  %v3475_v51 = vld [vmem:[%s4496_s7 + $0x154] ss:$12 sps:$4 sm:$0xff]  }
 0x27e   :  { %1618 = vmatprep.subr.bf16.mxu1 %v3409_v52  ;;  %3185 = vmatprep.subr.bf16.mxu0 %v3566_v39  ;;  %v3477_v52 = vld [vmem:[%s4496_s7 + $0x98] ss:$12 sps:$4 sm:$0xff]  }
 0x281   :  { %1619 = vmatpush1.bf16.msra.mxu1 %v3407_v54  ;;  %3186 = vmatpush3.bf16.msra.mxu0 %v3410_v55  ;;  %v3473_v54 = vld [vmem:[%s4496_s7 + $0x150] ss:$12 sps:$4 sm:$0xff]   ;;  %v3480_v55 = vld [vmem:[%s4496_s7 + $0x16c] ss:$12 sps:$4 sm:$0xff]  }
 0x282   :  { %1620 = vmatprep.subr.bf16.mxu1 %v3413_v56  ;;  %3187 = vmatprep.subr.bf16.mxu0 %v3566_v39  ;;  %v3481_v56 = vld [vmem:[%s4496_s7 + $0x170] ss:$12 sps:$4 sm:$0xff]  }
 0x283   :  { %v1058_v61 = vpop.f32.mrb[4].mxu1 }
 0x284   :  { %v1059_v62 = vadd.f32 %v1058_v61, %v843_v57  ;;  %v3173_v63 = vpop.f32.mrb[5].mxu1  ;;  %v3478_v57 = vld [vmem:[%s4496_s7 + $0x168] ss:$12 sps:$4 sm:$0xff]  }
 0x285   :  { %v1061_v0 = vpop.f32.mrb[6].mxu1  ;;  %1621 = vmatpush1.bf16.msra.mxu1 %v3411_v58  ;;  %3188 = vmatpush3.bf16.msra.mxu0 %v3414_v59  ;;  %v3482_v58 = vld [vmem:[%s4496_s7 + $0xb0] ss:$12 sps:$4 sm:$0xff]  }
 0x286   :  { %v1066_v3 = vmax.f32 %v1059_v62, 0.0  ;;  %v3174_v4 = vpop.f32.mrb[7].mxu1  ;;  %1622 = vmatprep.subr.bf16.mxu1 %v3417_v60  ;;  %3189 = vmatprep.subr.bf16.mxu0 %v3566_v39  ;;  %v3485_v59 = vld [vmem:[%s4496_s7 + $0x184] ss:$12 sps:$4 sm:$0xff]  }
 0x288   :  { %v1069_v7 = vpack.c.bf16 %v1066_v3, %v1066_v3 }
 0x289   :  { %1623 = vmatpush1.bf16.msra.mxu1 %v3415_v1  ;;  %3190 = vmatpush3.bf16.msra.mxu0 %v3418_v2  ;;  %v1166_v1 = vld [vmem:[%s4495_s6] sm:$0x7] }
 0x28a   :  { %2229 = vmatprep.subr.bf16.mxu1 %v3421_v5  ;;  %3013 = vmatprep.subr.bf16.mxu0 %v3446_v27  ;;  %v1179_v2 = vrot.slane %v1166_v1, %v4118_v53  ;;  %v1171_v3 = vrot.slane %v1166_v1, %v4053_v22  ;;  %v1175_v4 = vrot.slane %v1166_v1, %v4060_v24  ;;  %v3493_v27 = vld [vmem:[%s4496_s7 + $0x1b4] ss:$12 sps:$4 sm:$0xff]  }
 0x28b   :  { %v3533_v1 = vld [vmem:[%s4498_s9 + $0xb0] sm:$0xff]  }
 0x28c   :  { %1641 = vmatmul.mubr.bf16.vlgmr.msra.gmra.mrb[8].mxu1 %v1069_v7  ;;  %3192 = vmatmul.mubr.bf16.vlgmr.msra.gmra.mrb[68].mxu0 %v1069_v7 }
 0x28d   :  { %2230 = vmatpush1.bf16.msra.mxu1 %v3419_v6  ;;  %3014 = vmatpush3.bf16.msra.mxu0 %v3447_v28  ;;  %v3491_v28 = vld [vmem:[%s4496_s7 + $0x1b0] ss:$12 sps:$4 sm:$0xff]  }
 0x28e   :  { %2231 = vmatprep.subr.bf16.mxu1 %v3424_v9  ;;  %3015 = vmatprep.subr.bf16.mxu0 %v3451_v30  ;;  %v3495_v30 = vld [vmem:[%s4496_s7 + $0x1c8] ss:$12 sps:$4 sm:$0xff]  }
 0x291   :  { %2232 = vmatpush1.bf16.msra.mxu1 %v3422_v10  ;;  %3016 = vmatpush3.bf16.msra.mxu0 %v3452_v31  ;;  %v3498_v31 = vld [vmem:[%s4496_s7 + $0x1d0] ss:$12 sps:$4 sm:$0xff]  }
 0x292   :  { %2233 = vmatprep.subr.bf16.mxu1 %v3427_v11  ;;  %3017 = vmatprep.subr.bf16.mxu0 %v3456_v44  ;;  %v3499_v44 = vld [vmem:[%s4496_s7 + $0x1e0] ss:$12 sps:$4 sm:$0xff]  }
 0x295   :  { %2234 = vmatpush1.bf16.msra.mxu1 %v3425_v12  ;;  %3018 = vmatpush3.bf16.msra.mxu0 %v3457_v34  ;;  %v3505_v34 = vld [vmem:[%s4496_s7 + $0x1fc] ss:$12 sps:$4 sm:$0xff]  }
 0x296   :  { %2235 = vmatprep.subr.bf16.mxu1 %v3430_v14  ;;  %3019 = vmatprep.subr.bf16.mxu0 %v3461_v36  ;;  %v3506_v36 = vld [vmem:[%s4496_s7 + $0x200] ss:$12 sps:$4 sm:$0xff]  }
 0x299   :  { %2236 = vmatpush1.bf16.msra.mxu1 %v3428_v15  ;;  %3020 = vmatpush3.bf16.msra.mxu0 %v3462_v38  ;;  %v3507_v38 = vld [vmem:[%s4496_s7 + $0x210] ss:$12 sps:$4 sm:$0xff]  }
 0x29a   :  { %2237 = vmatprep.subr.bf16.mxu1 %v3433_v16  ;;  %3021 = vmatprep.subr.bf16.mxu0 %v3466_v41  ;;  %v3513_v41 = vld [vmem:[%s4496_s7 + $0x22c] ss:$12 sps:$4 sm:$0xff]  }
 0x29d   :  { %2238 = vmatpush1.bf16.msra.mxu1 %v3431_v17  ;;  %3022 = vmatpush3.bf16.msra.mxu0 %v3467_v43  ;;  %v3514_v43 = vld [vmem:[%s4496_s7 + $0x230] ss:$12 sps:$4 sm:$0xff]  }
 0x29e   :  { %2239 = vmatprep.subr.bf16.mxu1 %v3436_v8  ;;  %3023 = vmatprep.subr.bf16.mxu0 %v3471_v46  ;;  %v3515_v46 = vld [vmem:[%s4498_s9 + $0x80] sm:$0xff]  }
 0x2a1   :  { %2240 = vmatpush1.bf16.msra.mxu1 %v3434_v18  ;;  %3024 = vmatpush3.bf16.msra.mxu0 %v3472_v48  ;;  %v3517_v48 = vld [vmem:[%s4498_s9] sm:$0xff]  }
 0x2a2   :  { %2241 = vmatprep.subr.bf16.mxu1 %v3439_v19  ;;  %3025 = vmatprep.subr.bf16.mxu0 %v3476_v50  ;;  %v3483_v19 = vld [vmem:[%s4496_s7 + $0x180] ss:$12 sps:$4 sm:$0xff]  }
 0x2a3   :  { %v3518_v50 = vld [vmem:[%s4498_s9 + $0x88] sm:$0xff]  }
 0x2a5   :  { %2242 = vmatpush1.bf16.msra.mxu1 %v3437_v20  ;;  %3026 = vmatpush3.bf16.msra.mxu0 %v3477_v52  ;;  %v3486_v20 = vld [vmem:[%s4496_s7 + $0x188] ss:$12 sps:$4 sm:$0xff]  }
 0x2a6   :  { %2243 = vmatprep.subr.bf16.mxu1 %v3442_v21  ;;  %3027 = vmatprep.subr.bf16.mxu0 %v3481_v56  ;;  %v3522_v52 = vld [vmem:[%s4498_s9 + $0x50] sm:$0xff]   ;;  %v3525_v56 = vld [vmem:[%s4498_s9 + $0x58] sm:$0xff]  }
 0x2a9   :  { %2244 = vmatpush1.bf16.msra.mxu1 %v3440_v23  ;;  %3028 = vmatpush3.bf16.msra.mxu0 %v3482_v58  ;;  %v3489_v23 = vld [vmem:[%s4496_s7 + $0x19c] ss:$12 sps:$4 sm:$0xff]  }
 0x2aa   :  { %2245 = vmatprep.subr.bf16.mxu1 %v3445_v26  ;;  %3195 = vmatprep.subr.bf16.mxu0 %v3566_v39  ;;  %v3490_v26 = vld [vmem:[%s4496_s7 + $0x1a0] ss:$12 sps:$4 sm:$0xff]   ;;  %v3526_v58 = vld [vmem:[%s4498_s9 + $0x18] sm:$0xff]  }
 0x2ad   :  { %2246 = vmatpush1.bf16.msra.mxu1 %v3443_v25  ;;  %v3487_v25 = vld [vmem:[%s4496_s7 + $0x198] ss:$12 sps:$4 sm:$0xff]  }
 0x2ae   :  { %2247 = vmatprep.subr.bf16.mxu1 %v3450_v29  ;;  %v3494_v29 = vld [vmem:[%s4496_s7 + $0x1b8] ss:$12 sps:$4 sm:$0xff]  }
 0x2b1   :  { %2248 = vmatpush1.bf16.msra.mxu1 %v3448_v32  ;;  %v3501_v32 = vld [vmem:[%s4496_s7 + $0x1e4] ss:$12 sps:$4 sm:$0xff]  }
 0x2b2   :  { %2249 = vmatprep.subr.bf16.mxu1 %v3455_v33  ;;  %v3502_v33 = vld [vmem:[%s4496_s7 + $0x1e8] ss:$12 sps:$4 sm:$0xff]  }
 0x2b5   :  { %2250 = vmatpush1.bf16.msra.mxu1 %v3453_v35  ;;  %v3503_v35 = vld [vmem:[%s4496_s7 + $0x1f8] ss:$12 sps:$4 sm:$0xff]  }
 0x2b6   :  { %2251 = vmatprep.subr.bf16.mxu1 %v3460_v37  ;;  %v3509_v37 = vld [vmem:[%s4496_s7 + $0x214] ss:$12 sps:$4 sm:$0xff]  }
 0x2b9   :  { %2252 = vmatpush1.bf16.msra.mxu1 %v3458_v40  ;;  %v3510_v40 = vld [vmem:[%s4496_s7 + $0x218] ss:$12 sps:$4 sm:$0xff]  }
 0x2ba   :  { %2253 = vmatprep.subr.bf16.mxu1 %v3465_v42  ;;  %v3511_v42 = vld [vmem:[%s4496_s7 + $0x228] ss:$12 sps:$4 sm:$0xff]  }
 0x2bd   :  { %2254 = vmatpush1.bf16.msra.mxu1 %v3463_v45 }
 0x2be   :  { %2255 = vmatprep.subr.bf16.mxu1 %v3470_v47  ;;  %v3516_v47 = vld [vmem:[%s4498_s9 + $0x40] sm:$0xff]  }
 0x2c1   :  { %2256 = vmatpush1.bf16.msra.mxu1 %v3468_v49  ;;  %v3519_v49 = vld [vmem:[%s4498_s9 + $0x48] sm:$0xff]  }
 0x2c2   :  { %2257 = vmatprep.subr.bf16.mxu1 %v3475_v51  ;;  %v3520_v51 = vld [vmem:[%s4498_s9 + $0x8] sm:$0xff]  }
 0x2c5   :  { %2258 = vmatpush1.bf16.msra.mxu1 %v3473_v54  ;;  %v3521_v54 = vld [vmem:[%s4498_s9 + $0x90] sm:$0xff]  }
 0x2c6   :  { %2259 = vmatprep.subr.bf16.mxu1 %v3480_v55  ;;  %v3523_v55 = vld [vmem:[%s4498_s9 + $0x10] sm:$0xff]  }
 0x2c9   :  { %2260 = vmatpush1.bf16.msra.mxu1 %v3478_v57  ;;  %v3524_v57 = vld [vmem:[%s4498_s9 + $0x98] sm:$0xff]  }
 0x2ca   :  { %2270 = vmatprep.subr.bf16.mxu1 %v3485_v59  ;;  %v3528_v59 = vld [vmem:[%s4498_s9 + $0x60] sm:$0xff]  }
 0x33f   :  { %v2998_v60 = vpop.f32.mrb[64].mxu0 }
 0x340   :  { %v2999_v61 = vpop.f32.mrb[65].mxu0 }
 0x341   :  { %v3000_v62 = vadd.f32 %v2999_v61, %v2998_v60  ;;  %v3001_v63 = vpop.f32.mrb[66].mxu0  ;;  %v3527_v60 = vld [vmem:[%s4498_s9 + $0xa0] sm:$0xff]  }
 0x342   :  { %v3002_v0 = vpop.f32.mrb[67].mxu0  ;;  %v3529_v61 = vld [vmem:[%s4498_s9 + $0x20] sm:$0xff]   ;;  %v3530_v63 = vld [vmem:[%s4498_s9 + $0xa8] sm:$0xff]  }
 0x343   :  { %v1684_v5 = vadd.f32 %v3000_v62, %v1179_v2  ;;  %v3531_v62 = vld [vmem:[%s4498_s9 + $0x68] sm:$0xff]   ;;  %v3534_v2 = vld [vmem:[%s4498_s9 + $0x70] sm:$0xff]  }
 0x344   :  { %v3532_v0 = vld [vmem:[%s4498_s9 + $0x28] sm:$0xff]  }
 0x35f   :  { %v1642_v6 = vpop.f32.mrb[8].mxu1  ;;  %v1723_v7 = vpop.f32.mrb[68].mxu0 }
 0x360   :  { %v3235_v9 = vadd.f32 %v1642_v6, %v1171_v3  ;;  %v4303_v10 = vadd.f32 %v1723_v7, %v1684_v5  ;;  %v1644_v11 = vpop.f32.mrb[9].mxu1  ;;  %v3193_v12 = vpop.f32.mrb[69].mxu0  ;;  %v3535_v3 = vld [vmem:[%s4498_s9 + $0x30] sm:$0xff]   ;;  %v3537_v5 = vld [vmem:[%s4498_s9 + $0x78] sm:$0xff]  }
 0x361   :  { %v3236_v14 = vadd.f32 %v1644_v11, %v1175_v4  ;;  %v1646_v15 = vpop.f32.mrb[10].mxu1  ;;  %v1726_v16 = vpop.f32.mrb[70].mxu0  ;;  %v3536_v4 = vld [vmem:[%s4498_s9 + $0xb8] sm:$0xff]   ;;  %v1828_v12 = vld [vmem:[%s4497_s8] sm:$0x7] }
 0x362   :  { %v1647_v17 = vpop.f32.mrb[11].mxu1  ;;  %v3194_v8 = vpop.f32.mrb[71].mxu0  ;;  %v1729_v21 = vpack.c.bf16 %v3235_v9, %v3235_v9  ;;  %v1731_v45 = vpack.c.bf16 %v4303_v10, %v4303_v10  ;;  %v3538_v6 = vld [vmem:[%s4498_s9 + $0x38] sm:$0xff]   ;;  %v1833_v15 = vrot.slane %v1828_v12, %v4053_v22  ;;  %v1837_v16 = vrot.slane %v1828_v12, %v4060_v24 }
 0x363   :  { %v1730_v18 = vpack.c.bf16 %v3236_v14, %v3236_v14  ;;  %v1841_v14 = vrot.slane %v1828_v12, %v4118_v53 }
 0x365   :  { %2261 = vmatprep.mubr.bf16.mxu1 %v1730_v18  ;;  %2343 = vmatprep.mubr.bf16.mxu0 %v1730_v18 }
 0x366   :  { %2262 = vmatmul.mubr.bf16.vlgmr.msra.gmra.mrb[12].mxu1 %v1729_v21  ;;  %2344 = vmatmul.mubr.bf16.vlgmr.msra.gmra.mrb[72].mxu0 %v1729_v21 }
 0x367   :  { %2271 = vmatpush1.bf16.msra.mxu1 %v3483_v19  ;;  %3196 = vmatpush3.bf16.msra.mxu0 %v3486_v20 }
 0x368   :  { %2272 = vmatprep.subr.bf16.mxu1 %v3489_v23  ;;  %3197 = vmatprep.subr.bf16.mxu0 %v3566_v39 }
 0x369   :  { %2302 = vmatprep.mubr.bf16.mxu1 %v3565_v13  ;;  %3211 = vmatprep.mubr.msk.bf16.mxu0 %vm3567_vm1, %v3566_v39  ;;  %v3497_v13 = vld [vmem:[%s4496_s7 + $0x1cc] ss:$12 sps:$4 sm:$0xff]  }
 0x36b   :  { %2273 = vmatpush1.bf16.msra.mxu1 %v3487_v25  ;;  %3198 = vmatpush3.bf16.msra.mxu0 %v3490_v26 }
 0x36c   :  { %2274 = vmatprep.subr.bf16.mxu1 %v3493_v27  ;;  %3199 = vmatprep.subr.bf16.mxu0 %v3566_v39 }
 0x36f   :  { %2275 = vmatpush1.bf16.msra.mxu1 %v3491_v28  ;;  %3200 = vmatpush3.bf16.msra.mxu0 %v3494_v29 }
 0x370   :  { %2276 = vmatprep.subr.bf16.mxu1 %v3497_v13  ;;  %3201 = vmatprep.subr.bf16.mxu0 %v3566_v39 }
 0x373   :  { %2277 = vmatpush1.bf16.msra.mxu1 %v3495_v30  ;;  %3202 = vmatpush3.bf16.msra.mxu0 %v3498_v31 }
 0x374   :  { %2278 = vmatprep.subr.bf16.mxu1 %v3501_v32  ;;  %3203 = vmatprep.subr.bf16.mxu0 %v3566_v39 }
 0x377   :  { %2279 = vmatpush1.bf16.msra.mxu1 %v3499_v44  ;;  %3204 = vmatpush3.bf16.msra.mxu0 %v3502_v33 }
 0x378   :  { %2280 = vmatprep.subr.bf16.mxu1 %v3505_v34  ;;  %3205 = vmatprep.subr.bf16.mxu0 %v3566_v39 }
 0x37b   :  { %2281 = vmatpush1.bf16.msra.mxu1 %v3503_v35  ;;  %3206 = vmatpush3.bf16.msra.mxu0 %v3506_v36  ;;  %v2908_v35 = vld [vmem:[%s4499_s10] ss:$0 sm:$0xff]  ;;  %s3541_s10 = scalar_lea.vmem %s2692_s22, 32 }
 0x37c   :  { %2282 = vmatprep.subr.bf16.mxu1 %v3509_v37  ;;  %3207 = vmatprep.subr.bf16.mxu0 %v3566_v39  ;;  %p3542_p0 = scmp.ne.s32.totalorder %s2692_s22, %s3541_s10  ;;  %p3547_p2 = scmp.lt.s32.totalorder %s3541_s10, %s3541_s10 }
 0x37e   :  { %p3548_p3 = por %p3547_p2, %p3546_p1 }
 0x37f   :  { %2283 = vmatpush1.bf16.msra.mxu1 %v3507_v38  ;;  %3208 = vmatpush3.bf16.msra.mxu0 %v3510_v40 }
 0x380   :  { %2284 = vmatprep.subr.bf16.mxu1 %v3513_v41  ;;  %3209 = vmatprep.subr.bf16.mxu0 %v3566_v39  ;;  %p3549_p4 = pnand %p3548_p3, %p3542_p0 }
 0x383   :  { %2285 = vmatpush1.bf16.msra.mxu1 %v3511_v42  ;;  %3210 = vmatpush3.bf16.msra.mxu0 %v3514_v43 }
 0x384   :  { %3215 = vmatprep.subr.bf16.mxu1 %v3566_v39  ;;  %3044 = vmatprep.subr.bf16.mxu0 %v3516_v47 }
 0x386   :  { %2303 = vmatmul.mubr.bf16.vlgmr.msra.gmra.mrb[12].mxu1 %v1731_v45  ;;  %3212 = vmatmul.mubr.bf16.vlgmr.msra.gmra.mrb[76].mxu0 %v1731_v45 }
 0x387   :  { %3231 = vmatprep.mubr.msk.bf16.mxu1 %vm3567_vm1, %v3566_v39  ;;  %3216 = vmatpush3.bf16.msra.mxu1 %v3515_v46 }
 0x388   :  { %3045 = vmatpush3.bf16.msra.mxu0 %v3517_v48  ;;  %3217 = vmatprep.subr.bf16.mxu1 %v3566_v39 }
 0x389   :  { %3046 = vmatprep.subr.bf16.mxu0 %v3519_v49 }
 0x38b   :  { %3218 = vmatpush3.bf16.msra.mxu1 %v3518_v50 }
 0x38c   :  { %3047 = vmatpush3.bf16.msra.mxu0 %v3520_v51  ;;  %3219 = vmatprep.subr.bf16.mxu1 %v3566_v39 }
 0x38d   :  { %3048 = vmatprep.subr.bf16.mxu0 %v3522_v52 }
 0x38f   :  { %3220 = vmatpush3.bf16.msra.mxu1 %v3521_v54 }
 0x390   :  { %3049 = vmatpush3.bf16.msra.mxu0 %v3523_v55  ;;  %3221 = vmatprep.subr.bf16.mxu1 %v3566_v39 }
 0x391   :  { %3050 = vmatprep.subr.bf16.mxu0 %v3525_v56 }
 0x393   :  { %3222 = vmatpush3.bf16.msra.mxu1 %v3524_v57 }
 0x394   :  { %3051 = vmatpush3.bf16.msra.mxu0 %v3526_v58  ;;  %3223 = vmatprep.subr.bf16.mxu1 %v3566_v39 }
 0x395   :  { %3052 = vmatprep.subr.bf16.mxu0 %v3528_v59 }
 0x397   :  { %3224 = vmatpush3.bf16.msra.mxu1 %v3527_v60 }
 0x398   :  { %3053 = vmatpush3.bf16.msra.mxu0 %v3529_v61  ;;  %3225 = vmatprep.subr.bf16.mxu1 %v3566_v39 }
 0x399   :  { %3054 = vmatprep.subr.bf16.mxu0 %v3531_v62 }
 0x39b   :  { %3226 = vmatpush3.bf16.msra.mxu1 %v3530_v63 }
 0x39c   :  { %3055 = vmatpush3.bf16.msra.mxu0 %v3532_v0  ;;  %3227 = vmatprep.subr.bf16.mxu1 %v3566_v39 }
 0x39d   :  { %3056 = vmatprep.subr.bf16.mxu0 %v3534_v2 }
 0x39f   :  { %3228 = vmatpush3.bf16.msra.mxu1 %v3533_v1 }
 0x3a0   :  { %3229 = vmatprep.subr.bf16.mxu1 %v3566_v39  ;;  %3057 = vmatpush3.bf16.msra.mxu0 %v3535_v3 }
 0x3a1   :  { %3058 = vmatprep.subr.bf16.mxu0 %v3537_v5 }
 0x3a3   :  { %3230 = vmatpush3.bf16.msra.mxu1 %v3536_v4 }
 0x3a4   :  { %3059 = vmatpush3.bf16.msra.mxu0 %v3538_v6 }
 0x439   :  { %v3029_v7 = vpop.f32.mrb[72].mxu0 }
 0x43a   :  { %v3030_v9 = vpop.f32.mrb[73].mxu0 }
 0x43b   :  { %v3031_v10 = vadd.f32 %v3030_v9, %v3029_v7  ;;  %v3032_v39 = vpop.f32.mrb[74].mxu0 }
 0x43c   :  { %v3033_v11 = vpop.f32.mrb[75].mxu0 }
 0x43d   :  { %v2346_v17 = vadd.f32 %v3031_v10, %v1841_v14 }
 0x459   :  { %v2304_v8 = vpop.f32.mrb[12].mxu1  ;;  %v2385_v18 = vpop.f32.mrb[76].mxu0 }
 0x45a   :  { %v3237_v19 = vadd.f32 %v2304_v8, %v1833_v15  ;;  %v2386_v20 = vadd.f32 %v2385_v18, %v2346_v17  ;;  %v2306_v21 = vpop.f32.mrb[13].mxu1  ;;  %v3213_v23 = vpop.f32.mrb[77].mxu0 }
 0x45b   :  { %v3238_v25 = vadd.f32 %v2306_v21, %v1837_v16  ;;  %v2308_v26 = vpop.f32.mrb[14].mxu1  ;;  %v2388_v27 = vpop.f32.mrb[78].mxu0 }
 0x45c   :  { %v2391_v28 = vmax.f32 %v3237_v19, 0.0  ;;  %v2393_v29 = vmax.f32 %v2386_v20, 0.0  ;;  %v2309_v13 = vpop.f32.mrb[15].mxu1  ;;  %v3214_v30 = vpop.f32.mrb[79].mxu0 }
 0x45d   :  { %v2392_v31 = vmax.f32 %v3238_v25, 0.0 }
 0x45e   :  { %v2396_v53 = vpack.c.bf16 %v2393_v29, %v2393_v29  ;;  %v2394_v22 = vpack.c.bf16 %v2391_v28, %v2391_v28 }
 0x45f   :  { %v2395_v32 = vpack.c.bf16 %v2392_v31, %v2392_v31 }
 0x460   :  { %3232 = vmatmul.mubr.bf16.vlgmr.msra.gmra.mrb[16].mxu1 %v2396_v53 }
 0x461   :  { %2628 = vmatprep.mubr.bf16.mxu0 %v2395_v32 }
 0x462   :  { %2629 = vmatmul.mubr.bf16.vlgmr.msra.gmra.mrb[80].mxu0 %v2394_v22 }
 0x533   :  { %v2670_v24 = vpop.f32.mrb[16].mxu1 }
 0x534   :  { %v3233_v44 = vpop.f32.mrb[17].mxu1 }
 0x535   :  { %v3060_v33 = vpop.f32.mrb[80].mxu0  ;;  %v2673_v34 = vpop.f32.mrb[18].mxu1 }
 0x536   :  { %v3061_v36 = vpop.f32.mrb[81].mxu0  ;;  %v3234_v37 = vpop.f32.mrb[19].mxu1 }
 0x537   :  { %v3062_v38 = vadd.f32 %v3061_v36, %v3060_v33  ;;  %v3063_v40 = vpop.f32.mrb[82].mxu0 }
 0x538   :  { %v3064_v41 = vpop.f32.mrb[83].mxu0 }
 0x539   :  { %v2631_v42 = vadd.f32 %v3062_v38, %v2908_v35 }
 0x53b   :  { %v2671_v43 = vadd.f32 %v2670_v24, %v2631_v42 }
 0x53d   :  { %v2676_v45 = vmul.f32 %v2671_v43, %v2671_v43 }
 0x53f   :  { %v2678_v46 = vsel %vm2677_vm2, %v2676_v45, 0.0 }
 0x540   :  { %2679 = vadd.xlane.f32.xlu0 %v2678_v46 }
 0x5cd   :  { %v2680_v47 = vpop.xlane.xlu0 %2679 }
 0x5ce   :  { %v2681_v48 = vmax.f32 %v2680_v47, 1e-24 }
 0x5d0   :  { %3539 = vrsqrt.f32 %v2681_v48 }
 0x5da   :  { %v3540_v49 = vpop.eup %3539 }
 0x5db   :  { %v2683_v50 = vmul.f32 %v3540_v49, %v2671_v43 }
 0x5dd   :  { %2684 = vst [vmem:[#allocation2] sm:$0x3] %v2683_v50 }
 0x5de   :  { %3552 = shalt.err (!%p3549_p4)
}
 0x5df   :  { %s3553_s24 = scalar_lea.hbm %s4500_s11, 32 }
 0x5e0   :  { %p3554_p5 = scmp.ne.s32.totalorder %s4500_s11, %s3553_s24  ;;  %p3557_p6 = scmp.lt.u32.totalorder %s3553_s24, %s4500_s11 }
 0x5e2   :  { %p3559_p7 = pnand %p3557_p6, %p3554_p5 }
 0x5e4   :  { %3562 = shalt.err (!%p3559_p7)
}
 0x5e5   :  { %2694 = dma.vmem_to_hbm [thread:$0]  %s2692_s22, 32, %s4500_s11, [#allocation3]  }
 0x5e6   :  { %3563 = dma.done.wait [#allocation3], 32  }
 0x5e7   :  { %3564 = vsyncadd [#allocation3], 4294967264 }
 0x5e8   :  { %2698 = vsyncpa [#allocation3], 1 }

</bundles_post_ra>
